<compile_context>
chip_gen: v6e
topology: v6e:2x2x1
jax: 0.10.0
libtpu: 0.0.40
codegen_flags: <defaults>
</compile_context>

<pallas_src>
import jax
import jax.numpy as jnp
from jax.experimental import pallas as pl
from jax.experimental.pallas import tpu as pltpu


def _round_up(a, m):
    return (a + m - 1) // m * m


def simple_nn_kernel(x_ref, w1_ref, b1_ref, w2_ref, b2_ref, w3_ref, b3_ref, o_ref):
    # x_ref: (TB, 1024) bf16 -- channels already averaged in the wrapper
    # (the 1/3 scale is folded into w1).

    # layer1 + ReLU: (TB,1024) @ (1024,512) -- bf16 operands, f32 accumulation.
    h1 = jnp.dot(x_ref[...], w1_ref[...],
                 preferred_element_type=jnp.float32) + b1_ref[...]
    h1 = jnp.maximum(h1, 0.0)

    # layer2 + ReLU: (TB,512) @ (512,32)
    h2 = jnp.dot(h1.astype(jnp.bfloat16), w2_ref[...],
                 preferred_element_type=jnp.float32) + b2_ref[...]
    h2 = jnp.maximum(h2, 0.0)

    # layer3: (TB,32) @ (32,10)
    logits = jnp.dot(h2.astype(jnp.bfloat16), w3_ref[...],
                     preferred_element_type=jnp.float32) + b3_ref[...]

    # Numerically stable softmax over classes; reciprocal on the EUP slot.
    m = jnp.max(logits, axis=-1, keepdims=True)
    e = jnp.exp(logits - m)
    inv = pl.reciprocal(jnp.sum(e, axis=-1, keepdims=True), approx=True)
    o_ref[...] = e * inv


def simple_nn_forward(inputs, params, batch_tile=2048):
    """inputs: (B, 3, 32, 32) float32 (NCHW).  Returns (B, 10) softmax probs."""
    B = inputs.shape[0]
    w1, b1, w2, b2, w3, b3 = params

    # Glue pass (XLA fuses this): sum the 3 channels in f32 and flatten to (B, 1024).
    # The 1/3 average scale is folded into w1 below, so only the sum is needed here.
    x = (inputs[:, 0] + inputs[:, 1] + inputs[:, 2]).reshape(B, 32 * 32)

    # Batch padding / tiling:
    #  * pad to a multiple of 16 (bf16 packs 16 rows per sublane tile),
    #  * cap the tile at batch_tile,
    #  * if the batch is big enough, force >= 2 grid steps so the "parallel" batch
    #    axis can shard across both v7x TensorCores.
    b_pad = _round_up(B, 16)
    tb = min(batch_tile, b_pad)
    if b_pad > 16 and tb >= b_pad:
        tb = _round_up(pl.cdiv(b_pad, 2), 16)
    b_pad = _round_up(b_pad, tb)
    if b_pad != B:
        x = jnp.pad(x, ((0, b_pad - B), (0, 0)))

    # bf16 matmul operands (halves the dominant HBM byte stream); biases stay f32.
    x = x.astype(jnp.bfloat16)
    w1 = (w1 * (1.0 / 3.0)).astype(jnp.bfloat16)   # fold channel-average scale into w1
    w2 = w2.astype(jnp.bfloat16)
    w3 = w3.astype(jnp.bfloat16)

    const = lambda i: (0, 0)  # weights/biases: same block every step -> VMEM-resident

    out = pl.pallas_call(
        simple_nn_kernel,
        out_shape=jax.ShapeDtypeStruct((b_pad, 10), jnp.float32),
        grid=(b_pad // tb,),
        in_specs=[
            pl.BlockSpec((tb, 1024), lambda i: (i, 0)),   # x (batch-tiled, pre-averaged)
            pl.BlockSpec((1024, 512), const),             # w1 (pre-scaled by 1/3)
            pl.BlockSpec((1, 512), const),                # b1
            pl.BlockSpec((512, 32), const),               # w2
            pl.BlockSpec((1, 32), const),                 # b2
            pl.BlockSpec((32, 10), const),                # w3
            pl.BlockSpec((1, 10), const),                 # b3
        ],
        out_specs=pl.BlockSpec((tb, 10), lambda i: (i, 0)),
        compiler_params=pltpu.CompilerParams(
            dimension_semantics=("parallel",)),
    )(x, w1, b1, w2, b2, w3, b3)

    return out[:B]


def init_params(key):
    """Deterministic init mimicking nn.Linear's default U(-1/sqrt(fan_in), +...)."""
    def linear(key, fan_in, fan_out):
        kw, kb = jax.random.split(key)
        bound = 1.0 / jnp.sqrt(fan_in)
        # stored as (in_features, out_features) == W^T relative to PyTorch
        w = jax.random.uniform(kw, (fan_in, fan_out), jnp.float32, -bound, bound)
        b = jax.random.uniform(kb, (1, fan_out), jnp.float32, -bound, bound)
        return w, b

    k1, k2, k3 = jax.random.split(key, 3)
    w1, b1 = linear(k1, 32 * 32, 512)
    w2, b2 = linear(k2, 512, 32)
    w3, b3 = linear(k3, 32, 10)
    return (w1, b1, w2, b2, w3, b3)


if __name__ == "__main__":
    key = jax.random.PRNGKey(0)
    k_params, k_x = jax.random.split(key)

    params = init_params(k_params)
    # Small batch, PyTorch NCHW layout (B, 3, 32, 32) as the forward implies.
    x = jax.random.normal(k_x, (2, 3, 32, 32), dtype=jnp.float32)

    out = simple_nn_forward(x, params)
    out = jax.block_until_ready(out)

    # Full-precision JAX reference; kernel uses bf16 matmul operands and an approx
    # reciprocal, so the tolerance is loosened accordingly (f32 accumulation keeps
    # errors small).
    xf = (x[:, 0] + x[:, 1] + x[:, 2]).reshape(2, -1) / 3.0
    h = jnp.maximum(xf @ params[0] + params[1], 0.0)
    h = jnp.maximum(h @ params[2] + params[3], 0.0)
    ref = jax.nn.softmax(h @ params[4] + params[5], axis=1)

    assert out.shape == (2, 10)
    assert jnp.allclose(out, ref, atol=3e-2, rtol=0.0), float(jnp.max(jnp.abs(out - ref)))
    assert jnp.allclose(jnp.sum(out, axis=1), 1.0, atol=2e-3)

    print("KERNEL_OK")
</pallas_src>

<mosaic_0001>
module attributes {stable_mosaic.version = 11 : i64} {
  func.func @simple_nn_kernel(%arg0: i32, %arg1: memref<16x1024xbf16, #tpu.memory_space<vmem>>, %arg2: memref<1024x512xbf16, #tpu.memory_space<vmem>>, %arg3: memref<1x512xf32, #tpu.memory_space<vmem>>, %arg4: memref<512x32xbf16, #tpu.memory_space<vmem>>, %arg5: memref<1x32xf32, #tpu.memory_space<vmem>>, %arg6: memref<32x10xbf16, #tpu.memory_space<vmem>>, %arg7: memref<1x10xf32, #tpu.memory_space<vmem>>, %arg8: memref<16x10xf32, #tpu.memory_space<vmem>>) attributes {dimension_semantics = [#tpu.dimension_semantics<parallel>], iteration_bounds = array<i64: 1>, scalar_prefetch = 0 : i64, scratch_operands = 0 : i64, tpu.core_type = #tpu.core_type<tc>, window_params = [{transform_indices = @transform_0, window_bounds = array<i64: 16, 1024>}, {pipeline_mode = #tpu.pipeline_mode<synchronous>, transform_indices = @transform_1, window_bounds = array<i64: 1024, 512>}, {pipeline_mode = #tpu.pipeline_mode<synchronous>, transform_indices = @transform_2, window_bounds = array<i64: 1, 512>}, {pipeline_mode = #tpu.pipeline_mode<synchronous>, transform_indices = @transform_3, window_bounds = array<i64: 512, 32>}, {pipeline_mode = #tpu.pipeline_mode<synchronous>, transform_indices = @transform_4, window_bounds = array<i64: 1, 32>}, {pipeline_mode = #tpu.pipeline_mode<synchronous>, transform_indices = @transform_5, window_bounds = array<i64: 32, 10>}, {pipeline_mode = #tpu.pipeline_mode<synchronous>, transform_indices = @transform_6, window_bounds = array<i64: 1, 10>}, {transform_indices = @transform_7, window_bounds = array<i64: 16, 10>}]} {
    %c0 = arith.constant 0 : index
    %c0_0 = arith.constant 0 : index
    %0 = vector.load %arg1[%c0, %c0_0] : memref<16x1024xbf16, #tpu.memory_space<vmem>>, vector<16x1024xbf16>
    %c0_1 = arith.constant 0 : index
    %c0_2 = arith.constant 0 : index
    %1 = vector.load %arg2[%c0_1, %c0_2] : memref<1024x512xbf16, #tpu.memory_space<vmem>>, vector<1024x512xbf16>
    %cst = arith.constant dense<0.000000e+00> : vector<16x512xf32>
    %2 = tpu.matmul %0, %1, %cst {dimension_numbers = #tpu.dot_dimension_numbers<[1], [0], [0], [1], [0, 0, 1, 1], [], []>} : vector<16x1024xbf16>, vector<1024x512xbf16>, vector<16x512xf32> -> vector<16x512xf32>
    %c0_3 = arith.constant 0 : index
    %c0_4 = arith.constant 0 : index
    %3 = vector.load %arg3[%c0_3, %c0_4] : memref<1x512xf32, #tpu.memory_space<vmem>>, vector<1x512xf32>
    %4 = vector.broadcast %3 : vector<1x512xf32> to vector<16x512xf32>
    %5 = arith.addf %2, %4 : vector<16x512xf32>
    %cst_5 = arith.constant 0.000000e+00 : f32
    %6 = vector.broadcast %cst_5 : f32 to vector<16x512xf32>
    %7 = arith.maximumf %5, %6 : vector<16x512xf32>
    %8 = arith.truncf %7 : vector<16x512xf32> to vector<16x512xbf16>
    %c0_6 = arith.constant 0 : index
    %c0_7 = arith.constant 0 : index
    %9 = vector.load %arg4[%c0_6, %c0_7] : memref<512x32xbf16, #tpu.memory_space<vmem>>, vector<512x32xbf16>
    %cst_8 = arith.constant dense<0.000000e+00> : vector<16x32xf32>
    %10 = tpu.matmul %8, %9, %cst_8 {dimension_numbers = #tpu.dot_dimension_numbers<[1], [0], [0], [1], [0, 0, 1, 1], [], []>} : vector<16x512xbf16>, vector<512x32xbf16>, vector<16x32xf32> -> vector<16x32xf32>
    %c0_9 = arith.constant 0 : index
    %c0_10 = arith.constant 0 : index
    %11 = vector.load %arg5[%c0_9, %c0_10] : memref<1x32xf32, #tpu.memory_space<vmem>>, vector<1x32xf32>
    %12 = vector.broadcast %11 : vector<1x32xf32> to vector<16x32xf32>
    %13 = arith.addf %10, %12 : vector<16x32xf32>
    %cst_11 = arith.constant 0.000000e+00 : f32
    %14 = vector.broadcast %cst_11 : f32 to vector<16x32xf32>
    %15 = arith.maximumf %13, %14 : vector<16x32xf32>
    %16 = arith.truncf %15 : vector<16x32xf32> to vector<16x32xbf16>
    %c0_12 = arith.constant 0 : index
    %c0_13 = arith.constant 0 : index
    %17 = vector.load %arg6[%c0_12, %c0_13] : memref<32x10xbf16, #tpu.memory_space<vmem>>, vector<32x10xbf16>
    %cst_14 = arith.constant dense<0.000000e+00> : vector<16x10xf32>
    %18 = tpu.matmul %16, %17, %cst_14 {dimension_numbers = #tpu.dot_dimension_numbers<[1], [0], [0], [1], [0, 0, 1, 1], [], []>} : vector<16x32xbf16>, vector<32x10xbf16>, vector<16x10xf32> -> vector<16x10xf32>
    %c0_15 = arith.constant 0 : index
    %c0_16 = arith.constant 0 : index
    %19 = vector.load %arg7[%c0_15, %c0_16] : memref<1x10xf32, #tpu.memory_space<vmem>>, vector<1x10xf32>
    %20 = vector.broadcast %19 : vector<1x10xf32> to vector<16x10xf32>
    %21 = arith.addf %18, %20 : vector<16x10xf32>
    %cst_17 = arith.constant dense<0xFF800000> : vector<16xf32>
    %22 = vector.multi_reduction <maximumf>, %21, %cst_17 [1] : vector<16x10xf32> to vector<16xf32>
    %23 = vector.shape_cast %22 : vector<16xf32> to vector<16x1xf32>
    %24 = vector.broadcast %23 : vector<16x1xf32> to vector<16x10xf32>
    %25 = arith.subf %21, %24 : vector<16x10xf32>
    %26 = math.exp %25 : vector<16x10xf32>
    %cst_18 = arith.constant dense<0.000000e+00> : vector<16xf32>
    %27 = vector.multi_reduction <add>, %26, %cst_18 [1] : vector<16x10xf32> to vector<16xf32>
    %28 = vector.shape_cast %27 : vector<16xf32> to vector<16x1xf32>
    %29 = tpu.reciprocal %28 {approx = true} : vector<16x1xf32> -> vector<16x1xf32>
    %30 = vector.broadcast %29 : vector<16x1xf32> to vector<16x10xf32>
    %31 = arith.mulf %26, %30 : vector<16x10xf32>
    %c0_19 = arith.constant 0 : index
    %c0_20 = arith.constant 0 : index
    %32 = vector.load %arg8[%c0_19, %c0_20] : memref<16x10xf32, #tpu.memory_space<vmem>>, vector<16x10xf32>
    tpu.vector_store %arg8[%c0_19, %c0_20], %31 {strides = array<i32>} : memref<16x10xf32, #tpu.memory_space<vmem>>, vector<16x10xf32>,
    return
  }
  func.func @transform_0(%arg0: i32) -> (i32, i32) {
    %c0_i32 = arith.constant 0 : i32
    %c0_i32_0 = arith.constant 0 : i32
    return %arg0, %c0_i32 : i32, i32
  }
  func.func @transform_1(%arg0: i32) -> (i32, i32) {
    %c0_i32 = arith.constant 0 : i32
    %c0_i32_0 = arith.constant 0 : i32
    %c0_i32_1 = arith.constant 0 : i32
    return %c0_i32, %c0_i32_0 : i32, i32
  }
  func.func @transform_2(%arg0: i32) -> (i32, i32) {
    %c0_i32 = arith.constant 0 : i32
    %c0_i32_0 = arith.constant 0 : i32
    %c0_i32_1 = arith.constant 0 : i32
    return %c0_i32, %c0_i32_0 : i32, i32
  }
  func.func @transform_3(%arg0: i32) -> (i32, i32) {
    %c0_i32 = arith.constant 0 : i32
    %c0_i32_0 = arith.constant 0 : i32
    %c0_i32_1 = arith.constant 0 : i32
    return %c0_i32, %c0_i32_0 : i32, i32
  }
  func.func @transform_4(%arg0: i32) -> (i32, i32) {
    %c0_i32 = arith.constant 0 : i32
    %c0_i32_0 = arith.constant 0 : i32
    %c0_i32_1 = arith.constant 0 : i32
    return %c0_i32, %c0_i32_0 : i32, i32
  }
  func.func @transform_5(%arg0: i32) -> (i32, i32) {
    %c0_i32 = arith.constant 0 : i32
    %c0_i32_0 = arith.constant 0 : i32
    %c0_i32_1 = arith.constant 0 : i32
    return %c0_i32, %c0_i32_0 : i32, i32
  }
  func.func @transform_6(%arg0: i32) -> (i32, i32) {
    %c0_i32 = arith.constant 0 : i32
    %c0_i32_0 = arith.constant 0 : i32
    %c0_i32_1 = arith.constant 0 : i32
    return %c0_i32, %c0_i32_0 : i32, i32
  }
  func.func @transform_7(%arg0: i32) -> (i32, i32) {
    %c0_i32 = arith.constant 0 : i32
    %c0_i32_0 = arith.constant 0 : i32
    return %arg0, %c0_i32 : i32, i32
  }
}

</mosaic_0001>

<bundles_post_ra>
// kernel: tpu_custom_call.1
= control target key start
LH: loop header
LB: loop body
LE: loop exit
PB: predicated region body
PF: predicated region fallthrough
CT: control target
= control target key end

     0   :  { %12 = vsyncpa [#allocation3], 0  ;;  %s3551_s0 = inlined_call_operand.vmem [shape: bf16[16,1024], index: 0, kind: input, shape index: {}]   ;;  %s3552_s1 = inlined_call_operand.hbm [shape: bf16[1024,512], index: 1, kind: input, shape index: {}]   ;;  %s3553_s2 = inlined_call_operand.vmem [shape: f32[1,512], index: 2, kind: input, shape index: {}]   ;;  %s3554_s3 = inlined_call_operand.vmem [shape: bf16[512,32], index: 3, kind: input, shape index: {}]   ;;  %s3555_s4 = inlined_call_operand.vmem [shape: f32[1,32], index: 4, kind: input, shape index: {}]   ;;  %s3556_s5 = inlined_call_operand.vmem [shape: bf16[32,10], index: 5, kind: input, shape index: {}]   ;;  %s3557_s6 = inlined_call_operand.vmem [shape: f32[1,10], index: 6, kind: input, shape index: {}]   ;;  %s3558_s7 = inlined_call_operand.hbm [shape: f32[16,10], index: 7, kind: output, shape index: {}]  }
   0x1   :  { %13 = vsyncpa [#allocation4], 0  ;;  %s3296_s24 = smov [#allocation2]  }
   0x2   :  { %s21_s25 = sshll.u32 %s3296_s24, 4  ;;  %s22_s25 = int_to_ptr.vmem [resolvable:$true] %s21_s25 }
   0x3   :  { %s3260_s26 = scalar_lea.vmem %s22_s25, 32768  ;;  %p3265_p1 = scmp.lt.s32.totalorder %s22_s25, %s22_s25 }
   0x4   :  { %p3261_p0 = scmp.ne.s32.totalorder %s22_s25, %s3260_s26  ;;  %p3266_p2 = scmp.lt.s32.totalorder %s3260_s26, %s3260_s26 }
   0x6   :  { %p3267_p3 = por %p3266_p2, %p3265_p1 }
   0x8   :  { %p3268_p4 = pnand %p3267_p3, %p3261_p0 }
   0xa   :  { %3271 = shalt.err (!%p3268_p4)
}
   0xb   :  { %s3297_s27 = smov 256   ;;  %s3298_s28 = smov 16  }
   0xc   :  { %27 = dma.hbm_to_vmem [thread:$0]  %s3552_s1, 32768, %s22_s25, [#allocation3], %s3297_s27, %s3297_s27, %s3298_s28  }
   0xd   :  { %3292 = dma.done.wait [#allocation3], 32768  }
   0xe   :  { %3293 = vsyncadd [#allocation3], 4294934528  ;;  %v2826_v0 = vld [vmem:[#allocation2 + $0xe4] ss:$16 sps:$4 sm:$0xff]   ;;  %v2830_v2 = vld [vmem:[#allocation2 + $0xe0] ss:$16 sps:$4 sm:$0xff]  }
   0xf   :  { %v2828_v1 = vld [vmem:[#allocation2 + $0x2e4] ss:$16 sps:$4 sm:$0xff]   ;;  %1648 = vmatprep.subr.bf16.mxu0 %v2826_v0  ;;  %v2831_v3 = vld [vmem:[#allocation2 + $0x2e0] ss:$16 sps:$4 sm:$0xff]   ;;  %v43_v50 = vld [vmem:[%s3551_s0 + $0x8] sm:$0xff]  ;;  %vm3300_vm0 = vmmov 0  }
  0x10   :  { %1691 = vmatprep.subr.bf16.mxu1 %v2828_v1  ;;  %v2832_v4 = vld [vmem:[#allocation2 + $0xc4] ss:$16 sps:$4 sm:$0xff]   ;;  %1649 = vmatpush1.bf16.msra.mxu0 %v2830_v2  ;;  %v2836_v6 = vld [vmem:[#allocation2 + $0xc0] ss:$16 sps:$4 sm:$0xff]   ;;  %v47_v51 = vld [vmem:[%s3551_s0 + $0x28] sm:$0xff]  ;;  %vm2375_vm1 = vcmask 261120  }
  0x11   :  { %1692 = vmatpush1.bf16.msra.mxu1 %v2831_v3  ;;  %v2834_v5 = vld [vmem:[#allocation2 + $0x2c4] ss:$16 sps:$4 sm:$0xff]   ;;  %1650 = vmatprep.subr.bf16.mxu0 %v2832_v4  ;;  %v2837_v7 = vld [vmem:[#allocation2 + $0x2c0] ss:$16 sps:$4 sm:$0xff]   ;;  %v3361_v55 = vcombine.high %v43_v50, %v47_v51  ;;  %vm2420_vm2 = vcmask 80896  }
  0x12   :  { %1693 = vmatprep.subr.bf16.mxu1 %v2834_v5  ;;  %v2838_v8 = vld [vmem:[#allocation2 + $0xa4] ss:$16 sps:$4 sm:$0xff]   ;;  %v2842_v10 = vld [vmem:[#allocation2 + $0xa0] ss:$16 sps:$4 sm:$0xff]  }
  0x13   :  { %v2840_v9 = vld [vmem:[#allocation2 + $0x2a4] ss:$16 sps:$4 sm:$0xff]   ;;  %v2843_v11 = vld [vmem:[#allocation2 + $0x2a0] ss:$16 sps:$4 sm:$0xff]   ;;  %1723 = vmatprep.mubr.bf16.mxu1 %v3361_v55 }
  0x14   :  { %1651 = vmatpush1.bf16.msra.mxu0 %v2836_v6  ;;  %v2844_v12 = vld [vmem:[#allocation2 + $0x84] ss:$16 sps:$4 sm:$0xff]   ;;  %v2848_v14 = vld [vmem:[#allocation2 + $0x80] ss:$16 sps:$4 sm:$0xff]  }
  0x15   :  { %1694 = vmatpush1.bf16.msra.mxu1 %v2837_v7  ;;  %1652 = vmatprep.subr.bf16.mxu0 %v2838_v8  ;;  %v2846_v13 = vld [vmem:[#allocation2 + $0x284] ss:$16 sps:$4 sm:$0xff]   ;;  %v2849_v15 = vld [vmem:[#allocation2 + $0x280] ss:$16 sps:$4 sm:$0xff]  }
  0x16   :  { %1695 = vmatprep.subr.bf16.mxu1 %v2840_v9  ;;  %v2850_v16 = vld [vmem:[#allocation2 + $0x64] ss:$16 sps:$4 sm:$0xff]   ;;  %v2854_v18 = vld [vmem:[#allocation2 + $0x60] ss:$16 sps:$4 sm:$0xff]   ;;  %v3367_v9 = vcombine.low %v43_v50, %v47_v51 }
  0x17   :  { %v2852_v17 = vld [vmem:[#allocation2 + $0x264] ss:$16 sps:$4 sm:$0xff]   ;;  %v2855_v19 = vld [vmem:[#allocation2 + $0x260] ss:$16 sps:$4 sm:$0xff]  }
  0x18   :  { %1653 = vmatpush1.bf16.msra.mxu0 %v2842_v10  ;;  %v2856_v20 = vld [vmem:[#allocation2 + $0x44] ss:$16 sps:$4 sm:$0xff]   ;;  %v2860_v22 = vld [vmem:[#allocation2 + $0x40] ss:$16 sps:$4 sm:$0xff]  }
  0x19   :  { %1696 = vmatpush1.bf16.msra.mxu1 %v2843_v11  ;;  %1654 = vmatprep.subr.bf16.mxu0 %v2844_v12  ;;  %v2858_v21 = vld [vmem:[#allocation2 + $0x244] ss:$16 sps:$4 sm:$0xff]   ;;  %v2861_v23 = vld [vmem:[#allocation2 + $0x240] ss:$16 sps:$4 sm:$0xff]  }
  0x1a   :  { %1697 = vmatprep.subr.bf16.mxu1 %v2846_v13  ;;  %v2862_v24 = vld [vmem:[#allocation2 + $0x24] ss:$16 sps:$4 sm:$0xff]   ;;  %v2866_v26 = vld [vmem:[#allocation2 + $0x20] ss:$16 sps:$4 sm:$0xff]  }
  0x1b   :  { %v2864_v25 = vld [vmem:[#allocation2 + $0x224] ss:$16 sps:$4 sm:$0xff]   ;;  %v2867_v27 = vld [vmem:[#allocation2 + $0x220] ss:$16 sps:$4 sm:$0xff]  }
  0x1c   :  { %1655 = vmatpush1.bf16.msra.mxu0 %v2848_v14  ;;  %v2868_v28 = vld [vmem:[#allocation2 + $0x4] ss:$16 sps:$4 sm:$0xff]   ;;  %v2872_v30 = vld [vmem:[#allocation2] ss:$16 sps:$4 sm:$0xff]  }
  0x1d   :  { %1698 = vmatpush1.bf16.msra.mxu1 %v2849_v15  ;;  %1656 = vmatprep.subr.bf16.mxu0 %v2850_v16  ;;  %v2870_v29 = vld [vmem:[#allocation2 + $0x204] ss:$16 sps:$4 sm:$0xff]   ;;  %v2873_v31 = vld [vmem:[#allocation2 + $0x200] ss:$16 sps:$4 sm:$0xff]  }
  0x1e   :  { %1699 = vmatprep.subr.bf16.mxu1 %v2852_v17  ;;  %v2874_v32 = vld [vmem:[#allocation2 + $0x1e4] ss:$16 sps:$4 sm:$0xff]   ;;  %v2878_v34 = vld [vmem:[#allocation2 + $0x1e0] ss:$16 sps:$4 sm:$0xff]  }
  0x1f   :  { %v2876_v33 = vld [vmem:[#allocation2 + $0x3e4] ss:$16 sps:$4 sm:$0xff]   ;;  %v2879_v35 = vld [vmem:[#allocation2 + $0x3e0] ss:$16 sps:$4 sm:$0xff]  }
  0x20   :  { %1657 = vmatpush1.bf16.msra.mxu0 %v2854_v18  ;;  %v2880_v36 = vld [vmem:[#allocation2 + $0x1c4] ss:$16 sps:$4 sm:$0xff]   ;;  %v2884_v38 = vld [vmem:[#allocation2 + $0x1c0] ss:$16 sps:$4 sm:$0xff]  }
  0x21   :  { %1700 = vmatpush1.bf16.msra.mxu1 %v2855_v19  ;;  %1658 = vmatprep.subr.bf16.mxu0 %v2856_v20  ;;  %v2882_v37 = vld [vmem:[#allocation2 + $0x3c4] ss:$16 sps:$4 sm:$0xff]   ;;  %v2885_v39 = vld [vmem:[#allocation2 + $0x3c0] ss:$16 sps:$4 sm:$0xff]  }
  0x22   :  { %1701 = vmatprep.subr.bf16.mxu1 %v2858_v21  ;;  %v2886_v40 = vld [vmem:[#allocation2 + $0x1a4] ss:$16 sps:$4 sm:$0xff]   ;;  %v2890_v42 = vld [vmem:[#allocation2 + $0x1a0] ss:$16 sps:$4 sm:$0xff]  }
  0x23   :  { %v2888_v41 = vld [vmem:[#allocation2 + $0x3a4] ss:$16 sps:$4 sm:$0xff]   ;;  %v2891_v43 = vld [vmem:[#allocation2 + $0x3a0] ss:$16 sps:$4 sm:$0xff]  }
  0x24   :  { %1659 = vmatpush1.bf16.msra.mxu0 %v2860_v22  ;;  %v2892_v44 = vld [vmem:[#allocation2 + $0x184] ss:$16 sps:$4 sm:$0xff]   ;;  %v2896_v46 = vld [vmem:[#allocation2 + $0x180] ss:$16 sps:$4 sm:$0xff]  }
  0x25   :  { %1702 = vmatpush1.bf16.msra.mxu1 %v2861_v23  ;;  %1660 = vmatprep.subr.bf16.mxu0 %v2862_v24  ;;  %v2894_v45 = vld [vmem:[#allocation2 + $0x384] ss:$16 sps:$4 sm:$0xff]   ;;  %v2897_v47 = vld [vmem:[#allocation2 + $0x380] ss:$16 sps:$4 sm:$0xff]  }
  0x26   :  { %1703 = vmatprep.subr.bf16.mxu1 %v2864_v25  ;;  %v42_v48 = vld [vmem:[%s3551_s0] sm:$0xff] }
  0x27   :  { %v46_v49 = vld [vmem:[%s3551_s0 + $0x20] sm:$0xff] }
  0x28   :  { %1661 = vmatpush1.bf16.msra.mxu0 %v2866_v26  ;;  %v2898_v52 = vld [vmem:[#allocation2 + $0x164] ss:$16 sps:$4 sm:$0xff]   ;;  %v3359_v53 = vcombine.high %v42_v48, %v46_v49  ;;  %v2902_v56 = vld [vmem:[#allocation2 + $0x160] ss:$16 sps:$4 sm:$0xff]   ;;  %v3365_v8 = vcombine.low %v42_v48, %v46_v49 }
  0x29   :  { %1704 = vmatpush1.bf16.msra.mxu1 %v2867_v27  ;;  %1662 = vmatprep.subr.bf16.mxu0 %v2868_v28  ;;  %v2900_v54 = vld [vmem:[#allocation2 + $0x364] ss:$16 sps:$4 sm:$0xff]   ;;  %v2903_v57 = vld [vmem:[#allocation2 + $0x360] ss:$16 sps:$4 sm:$0xff]  }
  0x2a   :  { %1705 = vmatprep.subr.bf16.mxu1 %v2870_v29  ;;  %1680 = vmatprep.mubr.bf16.mxu0 %v3359_v53  ;;  %v2904_v58 = vld [vmem:[#allocation2 + $0x144] ss:$16 sps:$4 sm:$0xff]   ;;  %v2908_v60 = vld [vmem:[#allocation2 + $0x140] ss:$16 sps:$4 sm:$0xff]  }
  0x2b   :  { %v2906_v59 = vld [vmem:[#allocation2 + $0x344] ss:$16 sps:$4 sm:$0xff]   ;;  %v2909_v61 = vld [vmem:[#allocation2 + $0x340] ss:$16 sps:$4 sm:$0xff]  }
  0x2c   :  { %1663 = vmatpush1.bf16.msra.mxu0 %v2872_v30  ;;  %v2910_v62 = vld [vmem:[#allocation2 + $0x124] ss:$16 sps:$4 sm:$0xff]   ;;  %v2914_v0 = vld [vmem:[#allocation2 + $0x120] ss:$16 sps:$4 sm:$0xff]  }
  0x2d   :  { %1706 = vmatpush1.bf16.msra.mxu1 %v2873_v31  ;;  %1664 = vmatprep.subr.bf16.mxu0 %v2874_v32  ;;  %v2912_v63 = vld [vmem:[#allocation2 + $0x324] ss:$16 sps:$4 sm:$0xff]   ;;  %v2915_v1 = vld [vmem:[#allocation2 + $0x320] ss:$16 sps:$4 sm:$0xff]  }
  0x2e   :  { %1707 = vmatprep.subr.bf16.mxu1 %v2876_v33  ;;  %v2916_v2 = vld [vmem:[#allocation2 + $0x104] ss:$16 sps:$4 sm:$0xff]   ;;  %v2920_v4 = vld [vmem:[#allocation2 + $0x100] ss:$16 sps:$4 sm:$0xff]  }
  0x2f   :  { %v2918_v3 = vld [vmem:[#allocation2 + $0x304] ss:$16 sps:$4 sm:$0xff]   ;;  %v2921_v5 = vld [vmem:[#allocation2 + $0x300] ss:$16 sps:$4 sm:$0xff]  }
  0x30   :  { %1665 = vmatpush2.bf16.msra.mxu0 %v2878_v34  ;;  %v2924_v6 = vld [vmem:[#allocation2 + $0x4e4] ss:$16 sps:$4 sm:$0xff]   ;;  %v2922_v10 = vld [vmem:[#allocation2 + $0x4e0] ss:$16 sps:$4 sm:$0xff]  }
  0x31   :  { %1708 = vmatpush2.bf16.msra.mxu1 %v2879_v35  ;;  %1666 = vmatprep.subr.bf16.mxu0 %v2880_v36  ;;  %v2927_v7 = vld [vmem:[#allocation2 + $0x6e4] ss:$16 sps:$4 sm:$0xff]   ;;  %v2925_v11 = vld [vmem:[#allocation2 + $0x6e0] ss:$16 sps:$4 sm:$0xff]  }
  0x32   :  { %1709 = vmatprep.subr.bf16.mxu1 %v2882_v37  ;;  %v2930_v12 = vld [vmem:[#allocation2 + $0x4c4] ss:$16 sps:$4 sm:$0xff]   ;;  %v2928_v14 = vld [vmem:[#allocation2 + $0x4c0] ss:$16 sps:$4 sm:$0xff]  }
  0x33   :  { %v2933_v13 = vld [vmem:[#allocation2 + $0x6c4] ss:$16 sps:$4 sm:$0xff]   ;;  %v2931_v15 = vld [vmem:[#allocation2 + $0x6c0] ss:$16 sps:$4 sm:$0xff]  }
  0x34   :  { %1667 = vmatpush2.bf16.msra.mxu0 %v2884_v38  ;;  %v2936_v16 = vld [vmem:[#allocation2 + $0x4a4] ss:$16 sps:$4 sm:$0xff]   ;;  %v2934_v18 = vld [vmem:[#allocation2 + $0x4a0] ss:$16 sps:$4 sm:$0xff]   ;;  %v3384_v38 = vld [vmem:[%s3551_s0 + $0x18] sm:$0xff] }
  0x35   :  { %1710 = vmatpush2.bf16.msra.mxu1 %v2885_v39  ;;  %1668 = vmatprep.subr.bf16.mxu0 %v2886_v40  ;;  %v2939_v17 = vld [vmem:[#allocation2 + $0x6a4] ss:$16 sps:$4 sm:$0xff]   ;;  %v2937_v19 = vld [vmem:[#allocation2 + $0x6a0] ss:$16 sps:$4 sm:$0xff]   ;;  %v3389_v39 = vld [vmem:[%s3551_s0 + $0x38] sm:$0xff] }
  0x36   :  { %1711 = vmatprep.subr.bf16.mxu1 %v2888_v41  ;;  %v2942_v20 = vld [vmem:[#allocation2 + $0x484] ss:$16 sps:$4 sm:$0xff]   ;;  %v2940_v22 = vld [vmem:[#allocation2 + $0x480] ss:$16 sps:$4 sm:$0xff]  }
  0x37   :  { %v2945_v21 = vld [vmem:[#allocation2 + $0x684] ss:$16 sps:$4 sm:$0xff]   ;;  %v2943_v23 = vld [vmem:[#allocation2 + $0x680] ss:$16 sps:$4 sm:$0xff]  }
  0x38   :  { %1669 = vmatpush2.bf16.msra.mxu0 %v2890_v42  ;;  %v2948_v24 = vld [vmem:[#allocation2 + $0x464] ss:$16 sps:$4 sm:$0xff]   ;;  %v2946_v26 = vld [vmem:[#allocation2 + $0x460] ss:$16 sps:$4 sm:$0xff]  }
  0x39   :  { %1712 = vmatpush2.bf16.msra.mxu1 %v2891_v43  ;;  %1670 = vmatprep.subr.bf16.mxu0 %v2892_v44  ;;  %v2951_v25 = vld [vmem:[#allocation2 + $0x664] ss:$16 sps:$4 sm:$0xff]   ;;  %v2949_v27 = vld [vmem:[#allocation2 + $0x660] ss:$16 sps:$4 sm:$0xff]   ;;  %v3397_v43 = vcombine.high %v3384_v38, %v3389_v39 }
  0x3a   :  { %1713 = vmatprep.subr.bf16.mxu1 %v2894_v45  ;;  %v2954_v28 = vld [vmem:[#allocation2 + $0x444] ss:$16 sps:$4 sm:$0xff]   ;;  %v2952_v30 = vld [vmem:[#allocation2 + $0x440] ss:$16 sps:$4 sm:$0xff]  }
  0x3b   :  { %v2957_v29 = vld [vmem:[#allocation2 + $0x644] ss:$16 sps:$4 sm:$0xff]   ;;  %v2955_v31 = vld [vmem:[#allocation2 + $0x640] ss:$16 sps:$4 sm:$0xff]  }
  0x3c   :  { %1671 = vmatpush2.bf16.msra.mxu0 %v2896_v46  ;;  %v2960_v32 = vld [vmem:[#allocation2 + $0x424] ss:$16 sps:$4 sm:$0xff]   ;;  %v2958_v34 = vld [vmem:[#allocation2 + $0x420] ss:$16 sps:$4 sm:$0xff]  }
  0x3d   :  { %1714 = vmatpush2.bf16.msra.mxu1 %v2897_v47  ;;  %1672 = vmatprep.subr.bf16.mxu0 %v2898_v52  ;;  %v2963_v33 = vld [vmem:[#allocation2 + $0x624] ss:$16 sps:$4 sm:$0xff]   ;;  %v2961_v35 = vld [vmem:[#allocation2 + $0x620] ss:$16 sps:$4 sm:$0xff]  }
  0x3e   :  { %1715 = vmatprep.subr.bf16.mxu1 %v2900_v54  ;;  %v3374_v36 = vld [vmem:[%s3551_s0 + $0x10] sm:$0xff] }
  0x3f   :  { %v3379_v37 = vld [vmem:[%s3551_s0 + $0x30] sm:$0xff] }
  0x40   :  { %1673 = vmatpush2.bf16.msra.mxu0 %v2902_v56  ;;  %v2966_v40 = vld [vmem:[#allocation2 + $0x404] ss:$16 sps:$4 sm:$0xff]   ;;  %v3393_v41 = vcombine.high %v3374_v36, %v3379_v37  ;;  %v2964_v44 = vld [vmem:[#allocation2 + $0x400] ss:$16 sps:$4 sm:$0xff]  }
  0x41   :  { %1716 = vmatpush2.bf16.msra.mxu1 %v2903_v57  ;;  %1674 = vmatprep.subr.bf16.mxu0 %v2904_v58  ;;  %v2969_v42 = vld [vmem:[#allocation2 + $0x604] ss:$16 sps:$4 sm:$0xff]   ;;  %v2967_v45 = vld [vmem:[#allocation2 + $0x600] ss:$16 sps:$4 sm:$0xff]  }
  0x42   :  { %1717 = vmatprep.subr.bf16.mxu1 %v2906_v59  ;;  %v2972_v46 = vld [vmem:[#allocation2 + $0x5e4] ss:$16 sps:$4 sm:$0xff]   ;;  %v2970_v48 = vld [vmem:[#allocation2 + $0x5e0] ss:$16 sps:$4 sm:$0xff]  }
  0x43   :  { %v2975_v47 = vld [vmem:[#allocation2 + $0x7e4] ss:$16 sps:$4 sm:$0xff]   ;;  %v2973_v49 = vld [vmem:[#allocation2 + $0x7e0] ss:$16 sps:$4 sm:$0xff]  }
  0x44   :  { %1675 = vmatpush2.bf16.msra.mxu0 %v2908_v60  ;;  %v2978_v50 = vld [vmem:[#allocation2 + $0x5c4] ss:$16 sps:$4 sm:$0xff]   ;;  %v2976_v52 = vld [vmem:[#allocation2 + $0x5c0] ss:$16 sps:$4 sm:$0xff]  }
  0x45   :  { %1718 = vmatpush2.bf16.msra.mxu1 %v2909_v61  ;;  %1676 = vmatprep.subr.bf16.mxu0 %v2910_v62  ;;  %v2981_v51 = vld [vmem:[#allocation2 + $0x7c4] ss:$16 sps:$4 sm:$0xff]   ;;  %v2979_v54 = vld [vmem:[#allocation2 + $0x7c0] ss:$16 sps:$4 sm:$0xff]  }
  0x46   :  { %1719 = vmatprep.subr.bf16.mxu1 %v2912_v63  ;;  %v2984_v56 = vld [vmem:[#allocation2 + $0x5a4] ss:$16 sps:$4 sm:$0xff]   ;;  %v2982_v58 = vld [vmem:[#allocation2 + $0x5a0] ss:$16 sps:$4 sm:$0xff]  }
  0x47   :  { %v2987_v57 = vld [vmem:[#allocation2 + $0x7a4] ss:$16 sps:$4 sm:$0xff]   ;;  %v2985_v59 = vld [vmem:[#allocation2 + $0x7a0] ss:$16 sps:$4 sm:$0xff]  }
  0x48   :  { %1677 = vmatpush2.bf16.msra.mxu0 %v2914_v0  ;;  %v2990_v60 = vld [vmem:[#allocation2 + $0x584] ss:$16 sps:$4 sm:$0xff]   ;;  %v2988_v62 = vld [vmem:[#allocation2 + $0x580] ss:$16 sps:$4 sm:$0xff]  }
  0x49   :  { %1720 = vmatpush2.bf16.msra.mxu1 %v2915_v1  ;;  %1678 = vmatprep.subr.bf16.mxu0 %v2916_v2  ;;  %v2993_v61 = vld [vmem:[#allocation2 + $0x784] ss:$16 sps:$4 sm:$0xff]   ;;  %v2991_v63 = vld [vmem:[#allocation2 + $0x780] ss:$16 sps:$4 sm:$0xff]  }
  0x4a   :  { %1721 = vmatprep.subr.bf16.mxu1 %v2918_v3  ;;  %v2996_v0 = vld [vmem:[#allocation2 + $0x564] ss:$16 sps:$4 sm:$0xff]   ;;  %v2994_v2 = vld [vmem:[#allocation2 + $0x560] ss:$16 sps:$4 sm:$0xff]  }
  0x4b   :  { %v2999_v1 = vld [vmem:[#allocation2 + $0x764] ss:$16 sps:$4 sm:$0xff]   ;;  %v2997_v3 = vld [vmem:[#allocation2 + $0x760] ss:$16 sps:$4 sm:$0xff]  }
  0x4c   :  { %1679 = vmatpush2.bf16.msra.mxu0 %v2920_v4  ;;  %v3002_v4 = vld [vmem:[#allocation2 + $0x544] ss:$16 sps:$4 sm:$0xff]  }
  0x4d   :  { %1722 = vmatpush2.bf16.msra.mxu1 %v2921_v5  ;;  %1734 = vmatprep.subr.bf16.mxu0 %v2924_v6  ;;  %v3005_v5 = vld [vmem:[#allocation2 + $0x744] ss:$16 sps:$4 sm:$0xff]   ;;  %v3000_v6 = vld [vmem:[#allocation2 + $0x540] ss:$16 sps:$4 sm:$0xff]  }
  0x4e   :  { %1777 = vmatprep.subr.bf16.mxu1 %v2927_v7  ;;  %v3003_v7 = vld [vmem:[#allocation2 + $0x740] ss:$16 sps:$4 sm:$0xff]  }
  0x4f   :  { %1681 = vmatmul.mubr.bf16.vlgmr.msra.gmra.mxu0 %v3365_v8 }
  0x50   :  { %1724 = vmatmul.mubr.bf16.vlgmr.msra.gmra.mxu1 %v3367_v9  ;;  %1735 = vmatpush1.bf16.msra.mxu0 %v2922_v10  ;;  %v3008_v10 = vld [vmem:[#allocation2 + $0x524] ss:$16 sps:$4 sm:$0xff]  }
  0x51   :  { %1778 = vmatpush1.bf16.msra.mxu1 %v2925_v11  ;;  %1736 = vmatprep.subr.bf16.mxu0 %v2930_v12  ;;  %v3011_v11 = vld [vmem:[#allocation2 + $0x724] ss:$16 sps:$4 sm:$0xff]   ;;  %v3006_v12 = vld [vmem:[#allocation2 + $0x520] ss:$16 sps:$4 sm:$0xff]  }
  0x52   :  { %1779 = vmatprep.subr.bf16.mxu1 %v2933_v13  ;;  %1766 = vmatprep.mubr.bf16.mxu0 %v3393_v41  ;;  %v3009_v13 = vld [vmem:[#allocation2 + $0x720] ss:$16 sps:$4 sm:$0xff]  }
  0x53   :  { %1809 = vmatprep.mubr.bf16.mxu1 %v3397_v43 }
  0x54   :  { %1737 = vmatpush1.bf16.msra.mxu0 %v2928_v14  ;;  %v3014_v14 = vld [vmem:[#allocation2 + $0x504] ss:$16 sps:$4 sm:$0xff]  }
  0x55   :  { %1780 = vmatpush1.bf16.msra.mxu1 %v2931_v15  ;;  %1738 = vmatprep.subr.bf16.mxu0 %v2936_v16  ;;  %v3017_v15 = vld [vmem:[#allocation2 + $0x704] ss:$16 sps:$4 sm:$0xff]   ;;  %v3012_v16 = vld [vmem:[#allocation2 + $0x500] ss:$16 sps:$4 sm:$0xff]  }
  0x56   :  { %1781 = vmatprep.subr.bf16.mxu1 %v2939_v17  ;;  %v3015_v17 = vld [vmem:[#allocation2 + $0x700] ss:$16 sps:$4 sm:$0xff]  }
  0x58   :  { %1739 = vmatpush1.bf16.msra.mxu0 %v2934_v18  ;;  %v3020_v18 = vld [vmem:[#allocation2 + $0xec] ss:$16 sps:$4 sm:$0xff]  }
  0x59   :  { %1782 = vmatpush1.bf16.msra.mxu1 %v2937_v19  ;;  %1740 = vmatprep.subr.bf16.mxu0 %v2942_v20  ;;  %v3023_v19 = vld [vmem:[#allocation2 + $0x2ec] ss:$16 sps:$4 sm:$0xff]   ;;  %v3403_v20 = vcombine.low %v3374_v36, %v3379_v37 }
  0x5a   :  { %1783 = vmatprep.subr.bf16.mxu1 %v2945_v21  ;;  %v3407_v21 = vcombine.low %v3384_v38, %v3389_v39  ;;  %v3044_v36 = vld [vmem:[#allocation2 + $0x6c] ss:$16 sps:$4 sm:$0xff]   ;;  %v3042_v38 = vld [vmem:[#allocation2 + $0x68] ss:$16 sps:$4 sm:$0xff]  }
  0x5b   :  { %v3047_v37 = vld [vmem:[#allocation2 + $0x26c] ss:$16 sps:$4 sm:$0xff]  }
  0x5c   :  { %1741 = vmatpush1.bf16.msra.mxu0 %v2940_v22  ;;  %v3018_v22 = vld [vmem:[#allocation2 + $0xe8] ss:$16 sps:$4 sm:$0xff]   ;;  %v3053_v39 = vld [vmem:[#allocation2 + $0x24c] ss:$16 sps:$4 sm:$0xff]  }
  0x5d   :  { %1784 = vmatpush1.bf16.msra.mxu1 %v2943_v23  ;;  %1742 = vmatprep.subr.bf16.mxu0 %v2948_v24  ;;  %v3021_v23 = vld [vmem:[#allocation2 + $0x2e8] ss:$16 sps:$4 sm:$0xff]   ;;  %v3026_v24 = vld [vmem:[#allocation2 + $0xcc] ss:$16 sps:$4 sm:$0xff]  }
  0x5e   :  { %1785 = vmatprep.subr.bf16.mxu1 %v2951_v25  ;;  %v3029_v25 = vld [vmem:[#allocation2 + $0x2cc] ss:$16 sps:$4 sm:$0xff]  }
  0x60   :  { %1743 = vmatpush1.bf16.msra.mxu0 %v2946_v26  ;;  %v3024_v26 = vld [vmem:[#allocation2 + $0xc8] ss:$16 sps:$4 sm:$0xff]  }
  0x61   :  { %1786 = vmatpush1.bf16.msra.mxu1 %v2949_v27  ;;  %1744 = vmatprep.subr.bf16.mxu0 %v2954_v28  ;;  %v3027_v27 = vld [vmem:[#allocation2 + $0x2c8] ss:$16 sps:$4 sm:$0xff]   ;;  %v3032_v28 = vld [vmem:[#allocation2 + $0xac] ss:$16 sps:$4 sm:$0xff]  }
  0x62   :  { %1787 = vmatprep.subr.bf16.mxu1 %v2957_v29  ;;  %v3035_v29 = vld [vmem:[#allocation2 + $0x2ac] ss:$16 sps:$4 sm:$0xff]  }
  0x64   :  { %1745 = vmatpush1.bf16.msra.mxu0 %v2952_v30  ;;  %v3030_v30 = vld [vmem:[#allocation2 + $0xa8] ss:$16 sps:$4 sm:$0xff]  }
  0x65   :  { %1788 = vmatpush1.bf16.msra.mxu1 %v2955_v31  ;;  %1746 = vmatprep.subr.bf16.mxu0 %v2960_v32  ;;  %v3033_v31 = vld [vmem:[#allocation2 + $0x2a8] ss:$16 sps:$4 sm:$0xff]   ;;  %v3038_v32 = vld [vmem:[#allocation2 + $0x8c] ss:$16 sps:$4 sm:$0xff]  }
  0x66   :  { %1789 = vmatprep.subr.bf16.mxu1 %v2963_v33  ;;  %v3041_v33 = vld [vmem:[#allocation2 + $0x28c] ss:$16 sps:$4 sm:$0xff]  }
  0x68   :  { %1747 = vmatpush1.bf16.msra.mxu0 %v2958_v34  ;;  %v3036_v34 = vld [vmem:[#allocation2 + $0x88] ss:$16 sps:$4 sm:$0xff]  }
  0x69   :  { %1790 = vmatpush1.bf16.msra.mxu1 %v2961_v35  ;;  %1748 = vmatprep.subr.bf16.mxu0 %v2966_v40  ;;  %v3039_v35 = vld [vmem:[#allocation2 + $0x288] ss:$16 sps:$4 sm:$0xff]  }
  0x6a   :  { %1791 = vmatprep.subr.bf16.mxu1 %v2969_v42  ;;  %v3048_v40 = vld [vmem:[#allocation2 + $0x48] ss:$16 sps:$4 sm:$0xff]  }
  0x6b   :  { %v3051_v42 = vld [vmem:[#allocation2 + $0x248] ss:$16 sps:$4 sm:$0xff]  }
  0x6c   :  { %1749 = vmatpush1.bf16.msra.mxu0 %v2964_v44  ;;  %v3056_v44 = vld [vmem:[#allocation2 + $0x2c] ss:$16 sps:$4 sm:$0xff]  }
  0x6d   :  { %1792 = vmatpush1.bf16.msra.mxu1 %v2967_v45  ;;  %1750 = vmatprep.subr.bf16.mxu0 %v2972_v46  ;;  %v3059_v45 = vld [vmem:[#allocation2 + $0x22c] ss:$16 sps:$4 sm:$0xff]   ;;  %v3054_v46 = vld [vmem:[#allocation2 + $0x28] ss:$16 sps:$4 sm:$0xff]  }
  0x6e   :  { %1793 = vmatprep.subr.bf16.mxu1 %v2975_v47  ;;  %v3057_v47 = vld [vmem:[#allocation2 + $0x228] ss:$16 sps:$4 sm:$0xff]  }
  0x70   :  { %1751 = vmatpush2.bf16.msra.mxu0 %v2970_v48  ;;  %v3062_v48 = vld [vmem:[#allocation2 + $0xc] ss:$16 sps:$4 sm:$0xff]  }
  0x71   :  { %1794 = vmatpush2.bf16.msra.mxu1 %v2973_v49  ;;  %1752 = vmatprep.subr.bf16.mxu0 %v2978_v50  ;;  %v3065_v49 = vld [vmem:[#allocation2 + $0x20c] ss:$16 sps:$4 sm:$0xff]   ;;  %v3060_v50 = vld [vmem:[#allocation2 + $0x8] ss:$16 sps:$4 sm:$0xff]  }
  0x72   :  { %1795 = vmatprep.subr.bf16.mxu1 %v2981_v51  ;;  %v3063_v51 = vld [vmem:[#allocation2 + $0x208] ss:$16 sps:$4 sm:$0xff]  }
  0x74   :  { %1753 = vmatpush2.bf16.msra.mxu0 %v2976_v52  ;;  %v3068_v52 = vld [vmem:[#allocation2 + $0x1ec] ss:$16 sps:$4 sm:$0xff]  }
  0x75   :  { %1796 = vmatpush2.bf16.msra.mxu1 %v2979_v54  ;;  %1754 = vmatprep.subr.bf16.mxu0 %v2984_v56  ;;  %v3071_v54 = vld [vmem:[#allocation2 + $0x3ec] ss:$16 sps:$4 sm:$0xff]   ;;  %v3066_v56 = vld [vmem:[#allocation2 + $0x1e8] ss:$16 sps:$4 sm:$0xff]  }
  0x76   :  { %1797 = vmatprep.subr.bf16.mxu1 %v2987_v57  ;;  %v3069_v57 = vld [vmem:[#allocation2 + $0x3e8] ss:$16 sps:$4 sm:$0xff]  }
  0x78   :  { %1755 = vmatpush2.bf16.msra.mxu0 %v2982_v58  ;;  %v3074_v58 = vld [vmem:[#allocation2 + $0x1cc] ss:$16 sps:$4 sm:$0xff]  }
  0x79   :  { %1798 = vmatpush2.bf16.msra.mxu1 %v2985_v59  ;;  %1756 = vmatprep.subr.bf16.mxu0 %v2990_v60  ;;  %v3077_v59 = vld [vmem:[#allocation2 + $0x3cc] ss:$16 sps:$4 sm:$0xff]   ;;  %v3072_v60 = vld [vmem:[#allocation2 + $0x1c8] ss:$16 sps:$4 sm:$0xff]  }
  0x7a   :  { %1799 = vmatprep.subr.bf16.mxu1 %v2993_v61  ;;  %v3075_v61 = vld [vmem:[#allocation2 + $0x3c8] ss:$16 sps:$4 sm:$0xff]  }
  0x7c   :  { %1757 = vmatpush2.bf16.msra.mxu0 %v2988_v62  ;;  %v3080_v62 = vld [vmem:[#allocation2 + $0x1ac] ss:$16 sps:$4 sm:$0xff]  }
  0x7d   :  { %1800 = vmatpush2.bf16.msra.mxu1 %v2991_v63  ;;  %1758 = vmatprep.subr.bf16.mxu0 %v2996_v0  ;;  %v3083_v63 = vld [vmem:[#allocation2 + $0x3ac] ss:$16 sps:$4 sm:$0xff]   ;;  %v3078_v0 = vld [vmem:[#allocation2 + $0x1a8] ss:$16 sps:$4 sm:$0xff]  }
  0x7e   :  { %1801 = vmatprep.subr.bf16.mxu1 %v2999_v1  ;;  %v3081_v1 = vld [vmem:[#allocation2 + $0x3a8] ss:$16 sps:$4 sm:$0xff]  }
  0x80   :  { %1759 = vmatpush2.bf16.msra.mxu0 %v2994_v2  ;;  %v3086_v2 = vld [vmem:[#allocation2 + $0x18c] ss:$16 sps:$4 sm:$0xff]  }
  0x81   :  { %1802 = vmatpush2.bf16.msra.mxu1 %v2997_v3  ;;  %1760 = vmatprep.subr.bf16.mxu0 %v3002_v4  ;;  %v3089_v3 = vld [vmem:[#allocation2 + $0x38c] ss:$16 sps:$4 sm:$0xff]   ;;  %v3084_v4 = vld [vmem:[#allocation2 + $0x188] ss:$16 sps:$4 sm:$0xff]  }
  0x82   :  { %1803 = vmatprep.subr.bf16.mxu1 %v3005_v5  ;;  %v3087_v5 = vld [vmem:[#allocation2 + $0x388] ss:$16 sps:$4 sm:$0xff]  }
  0x84   :  { %1761 = vmatpush2.bf16.msra.mxu0 %v3000_v6  ;;  %v3092_v6 = vld [vmem:[#allocation2 + $0x16c] ss:$16 sps:$4 sm:$0xff]  }
  0x85   :  { %1804 = vmatpush2.bf16.msra.mxu1 %v3003_v7  ;;  %1762 = vmatprep.subr.bf16.mxu0 %v3008_v10  ;;  %v3095_v7 = vld [vmem:[#allocation2 + $0x36c] ss:$16 sps:$4 sm:$0xff]   ;;  %v3090_v10 = vld [vmem:[#allocation2 + $0x168] ss:$16 sps:$4 sm:$0xff]  }
  0x86   :  { %1805 = vmatprep.subr.bf16.mxu1 %v3011_v11  ;;  %v3093_v11 = vld [vmem:[#allocation2 + $0x368] ss:$16 sps:$4 sm:$0xff]  }
  0x88   :  { %1763 = vmatpush2.bf16.msra.mxu0 %v3006_v12  ;;  %v3098_v12 = vld [vmem:[#allocation2 + $0x14c] ss:$16 sps:$4 sm:$0xff]  }
  0x89   :  { %1806 = vmatpush2.bf16.msra.mxu1 %v3009_v13  ;;  %1764 = vmatprep.subr.bf16.mxu0 %v3014_v14  ;;  %v3101_v13 = vld [vmem:[#allocation2 + $0x34c] ss:$16 sps:$4 sm:$0xff]   ;;  %v3096_v14 = vld [vmem:[#allocation2 + $0x148] ss:$16 sps:$4 sm:$0xff]  }
  0x8a   :  { %1807 = vmatprep.subr.bf16.mxu1 %v3017_v15  ;;  %v3099_v15 = vld [vmem:[#allocation2 + $0x348] ss:$16 sps:$4 sm:$0xff]  }
  0x8c   :  { %1765 = vmatpush2.bf16.msra.mxu0 %v3012_v16  ;;  %v3104_v16 = vld [vmem:[#allocation2 + $0x12c] ss:$16 sps:$4 sm:$0xff]  }
  0x8d   :  { %1808 = vmatpush2.bf16.msra.mxu1 %v3015_v17  ;;  %1820 = vmatprep.subr.bf16.mxu0 %v3020_v18  ;;  %v3107_v17 = vld [vmem:[#allocation2 + $0x32c] ss:$16 sps:$4 sm:$0xff]   ;;  %v3102_v18 = vld [vmem:[#allocation2 + $0x128] ss:$16 sps:$4 sm:$0xff]  }
  0x8e   :  { %1863 = vmatprep.subr.bf16.mxu1 %v3023_v19  ;;  %v3105_v19 = vld [vmem:[#allocation2 + $0x328] ss:$16 sps:$4 sm:$0xff]  }
  0x8f   :  { %1767 = vmatmul.mubr.bf16.vlgmr.msra.gmra.mxu0 %v3403_v20 }
  0x90   :  { %1810 = vmatmul.mubr.bf16.vlgmr.msra.gmra.mxu1 %v3407_v21  ;;  %1821 = vmatpush1.bf16.msra.mxu0 %v3018_v22  ;;  %v3110_v22 = vld [vmem:[#allocation2 + $0x10c] ss:$16 sps:$4 sm:$0xff]  }
  0x91   :  { %1864 = vmatpush1.bf16.msra.mxu1 %v3021_v23  ;;  %1822 = vmatprep.subr.bf16.mxu0 %v3026_v24  ;;  %v3113_v23 = vld [vmem:[#allocation2 + $0x30c] ss:$16 sps:$4 sm:$0xff]   ;;  %v3108_v24 = vld [vmem:[#allocation2 + $0x108] ss:$16 sps:$4 sm:$0xff]  }
  0x92   :  { %1865 = vmatprep.subr.bf16.mxu1 %v3029_v25  ;;  %1852 = vmatprep.mubr.bf16.mxu0 %v3359_v53  ;;  %v3045_v53 = vld [vmem:[#allocation2 + $0x268] ss:$16 sps:$4 sm:$0xff]  }
  0x93   :  { %1895 = vmatprep.mubr.bf16.mxu1 %v3361_v55  ;;  %v3050_v55 = vld [vmem:[#allocation2 + $0x4c] ss:$16 sps:$4 sm:$0xff]   ;;  %v3111_v25 = vld [vmem:[#allocation2 + $0x308] ss:$16 sps:$4 sm:$0xff]  }
  0x94   :  { %1823 = vmatpush1.bf16.msra.mxu0 %v3024_v26  ;;  %v3116_v26 = vld [vmem:[#allocation2 + $0x4ec] ss:$16 sps:$4 sm:$0xff]  }
  0x95   :  { %1866 = vmatpush1.bf16.msra.mxu1 %v3027_v27  ;;  %1824 = vmatprep.subr.bf16.mxu0 %v3032_v28  ;;  %v3119_v27 = vld [vmem:[#allocation2 + $0x6ec] ss:$16 sps:$4 sm:$0xff]   ;;  %v3114_v28 = vld [vmem:[#allocation2 + $0x4e8] ss:$16 sps:$4 sm:$0xff]  }
  0x96   :  { %1867 = vmatprep.subr.bf16.mxu1 %v3035_v29  ;;  %v3117_v29 = vld [vmem:[#allocation2 + $0x6e8] ss:$16 sps:$4 sm:$0xff]  }
  0x98   :  { %1825 = vmatpush1.bf16.msra.mxu0 %v3030_v30  ;;  %v3122_v30 = vld [vmem:[#allocation2 + $0x4cc] ss:$16 sps:$4 sm:$0xff]  }
  0x99   :  { %1868 = vmatpush1.bf16.msra.mxu1 %v3033_v31  ;;  %1826 = vmatprep.subr.bf16.mxu0 %v3038_v32  ;;  %v3125_v31 = vld [vmem:[#allocation2 + $0x6cc] ss:$16 sps:$4 sm:$0xff]   ;;  %v3120_v32 = vld [vmem:[#allocation2 + $0x4c8] ss:$16 sps:$4 sm:$0xff]  }
  0x9a   :  { %1869 = vmatprep.subr.bf16.mxu1 %v3041_v33  ;;  %v3123_v33 = vld [vmem:[#allocation2 + $0x6c8] ss:$16 sps:$4 sm:$0xff]  }
  0x9c   :  { %1827 = vmatpush1.bf16.msra.mxu0 %v3036_v34  ;;  %v3128_v34 = vld [vmem:[#allocation2 + $0x4ac] ss:$16 sps:$4 sm:$0xff]  }
  0x9d   :  { %1870 = vmatpush1.bf16.msra.mxu1 %v3039_v35  ;;  %1828 = vmatprep.subr.bf16.mxu0 %v3044_v36  ;;  %v3131_v35 = vld [vmem:[#allocation2 + $0x6ac] ss:$16 sps:$4 sm:$0xff]   ;;  %v3126_v36 = vld [vmem:[#allocation2 + $0x4a8] ss:$16 sps:$4 sm:$0xff]  }
  0x9e   :  { %1871 = vmatprep.subr.bf16.mxu1 %v3047_v37  ;;  %v3129_v37 = vld [vmem:[#allocation2 + $0x6a8] ss:$16 sps:$4 sm:$0xff]  }
  0xa0   :  { %1829 = vmatpush1.bf16.msra.mxu0 %v3042_v38  ;;  %v3134_v38 = vld [vmem:[#allocation2 + $0x48c] ss:$16 sps:$4 sm:$0xff]  }
  0xa1   :  { %1872 = vmatpush1.bf16.msra.mxu1 %v3045_v53  ;;  %1830 = vmatprep.subr.bf16.mxu0 %v3050_v55  ;;  %v3135_v53 = vld [vmem:[#allocation2 + $0x688] ss:$16 sps:$4 sm:$0xff]   ;;  %v3140_v55 = vld [vmem:[#allocation2 + $0x46c] ss:$16 sps:$4 sm:$0xff]  }
  0xa2   :  { %1873 = vmatprep.subr.bf16.mxu1 %v3053_v39  ;;  %v3143_v39 = vld [vmem:[#allocation2 + $0x66c] ss:$16 sps:$4 sm:$0xff]  }
  0xa4   :  { %1831 = vmatpush1.bf16.msra.mxu0 %v3048_v40  ;;  %v3146_v40 = vld [vmem:[#allocation2 + $0x44c] ss:$16 sps:$4 sm:$0xff]  }
  0xa5   :  { %1874 = vmatpush1.bf16.msra.mxu1 %v3051_v42  ;;  %1832 = vmatprep.subr.bf16.mxu0 %v3056_v44  ;;  %v3149_v42 = vld [vmem:[#allocation2 + $0x64c] ss:$16 sps:$4 sm:$0xff]   ;;  %v3144_v44 = vld [vmem:[#allocation2 + $0x448] ss:$16 sps:$4 sm:$0xff]  }
  0xa6   :  { %1875 = vmatprep.subr.bf16.mxu1 %v3059_v45  ;;  %v3147_v45 = vld [vmem:[#allocation2 + $0x648] ss:$16 sps:$4 sm:$0xff]  }
  0xa8   :  { %1833 = vmatpush1.bf16.msra.mxu0 %v3054_v46  ;;  %v3152_v46 = vld [vmem:[#allocation2 + $0x42c] ss:$16 sps:$4 sm:$0xff]  }
  0xa9   :  { %1876 = vmatpush1.bf16.msra.mxu1 %v3057_v47  ;;  %1834 = vmatprep.subr.bf16.mxu0 %v3062_v48  ;;  %v3155_v47 = vld [vmem:[#allocation2 + $0x62c] ss:$16 sps:$4 sm:$0xff]   ;;  %v3150_v48 = vld [vmem:[#allocation2 + $0x428] ss:$16 sps:$4 sm:$0xff]  }
  0xaa   :  { %1877 = vmatprep.subr.bf16.mxu1 %v3065_v49  ;;  %v3153_v49 = vld [vmem:[#allocation2 + $0x628] ss:$16 sps:$4 sm:$0xff]  }
  0xac   :  { %1835 = vmatpush1.bf16.msra.mxu0 %v3060_v50  ;;  %v3158_v50 = vld [vmem:[#allocation2 + $0x40c] ss:$16 sps:$4 sm:$0xff]  }
  0xad   :  { %1878 = vmatpush1.bf16.msra.mxu1 %v3063_v51  ;;  %1836 = vmatprep.subr.bf16.mxu0 %v3068_v52  ;;  %v3161_v51 = vld [vmem:[#allocation2 + $0x60c] ss:$16 sps:$4 sm:$0xff]   ;;  %v3156_v52 = vld [vmem:[#allocation2 + $0x408] ss:$16 sps:$4 sm:$0xff]  }
  0xae   :  { %1879 = vmatprep.subr.bf16.mxu1 %v3071_v54  ;;  %v3159_v54 = vld [vmem:[#allocation2 + $0x608] ss:$16 sps:$4 sm:$0xff]  }
  0xb0   :  { %1837 = vmatpush2.bf16.msra.mxu0 %v3066_v56  ;;  %v3164_v56 = vld [vmem:[#allocation2 + $0x5ec] ss:$16 sps:$4 sm:$0xff]  }
  0xb1   :  { %1880 = vmatpush2.bf16.msra.mxu1 %v3069_v57  ;;  %1838 = vmatprep.subr.bf16.mxu0 %v3074_v58  ;;  %v3167_v57 = vld [vmem:[#allocation2 + $0x7ec] ss:$16 sps:$4 sm:$0xff]   ;;  %v3162_v58 = vld [vmem:[#allocation2 + $0x5e8] ss:$16 sps:$4 sm:$0xff]  }
  0xb2   :  { %1881 = vmatprep.subr.bf16.mxu1 %v3077_v59  ;;  %v3165_v59 = vld [vmem:[#allocation2 + $0x7e8] ss:$16 sps:$4 sm:$0xff]  }
  0xb4   :  { %1839 = vmatpush2.bf16.msra.mxu0 %v3072_v60  ;;  %v3170_v60 = vld [vmem:[#allocation2 + $0x5cc] ss:$16 sps:$4 sm:$0xff]  }
  0xb5   :  { %1882 = vmatpush2.bf16.msra.mxu1 %v3075_v61  ;;  %1840 = vmatprep.subr.bf16.mxu0 %v3080_v62  ;;  %v3173_v61 = vld [vmem:[#allocation2 + $0x7cc] ss:$16 sps:$4 sm:$0xff]   ;;  %v3168_v62 = vld [vmem:[#allocation2 + $0x5c8] ss:$16 sps:$4 sm:$0xff]  }
  0xb6   :  { %1883 = vmatprep.subr.bf16.mxu1 %v3083_v63  ;;  %v3171_v63 = vld [vmem:[#allocation2 + $0x7c8] ss:$16 sps:$4 sm:$0xff]  }
  0xb8   :  { %1841 = vmatpush2.bf16.msra.mxu0 %v3078_v0  ;;  %v3176_v0 = vld [vmem:[#allocation2 + $0x5ac] ss:$16 sps:$4 sm:$0xff]  }
  0xb9   :  { %1884 = vmatpush2.bf16.msra.mxu1 %v3081_v1  ;;  %1842 = vmatprep.subr.bf16.mxu0 %v3086_v2  ;;  %v3179_v1 = vld [vmem:[#allocation2 + $0x7ac] ss:$16 sps:$4 sm:$0xff]   ;;  %v3174_v2 = vld [vmem:[#allocation2 + $0x5a8] ss:$16 sps:$4 sm:$0xff]  }
  0xba   :  { %1885 = vmatprep.subr.bf16.mxu1 %v3089_v3  ;;  %v3177_v3 = vld [vmem:[#allocation2 + $0x7a8] ss:$16 sps:$4 sm:$0xff]  }
  0xbc   :  { %1843 = vmatpush2.bf16.msra.mxu0 %v3084_v4  ;;  %v3182_v4 = vld [vmem:[#allocation2 + $0x58c] ss:$16 sps:$4 sm:$0xff]  }
  0xbd   :  { %1886 = vmatpush2.bf16.msra.mxu1 %v3087_v5  ;;  %1844 = vmatprep.subr.bf16.mxu0 %v3092_v6  ;;  %v3185_v5 = vld [vmem:[#allocation2 + $0x78c] ss:$16 sps:$4 sm:$0xff]   ;;  %v3180_v6 = vld [vmem:[#allocation2 + $0x588] ss:$16 sps:$4 sm:$0xff]  }
  0xbe   :  { %1887 = vmatprep.subr.bf16.mxu1 %v3095_v7  ;;  %v3183_v7 = vld [vmem:[#allocation2 + $0x788] ss:$16 sps:$4 sm:$0xff]  }
  0xc0   :  { %1845 = vmatpush2.bf16.msra.mxu0 %v3090_v10  ;;  %v3188_v10 = vld [vmem:[#allocation2 + $0x56c] ss:$16 sps:$4 sm:$0xff]  }
  0xc1   :  { %1888 = vmatpush2.bf16.msra.mxu1 %v3093_v11  ;;  %1846 = vmatprep.subr.bf16.mxu0 %v3098_v12  ;;  %v3191_v11 = vld [vmem:[#allocation2 + $0x76c] ss:$16 sps:$4 sm:$0xff]   ;;  %v3186_v12 = vld [vmem:[#allocation2 + $0x568] ss:$16 sps:$4 sm:$0xff]  }
  0xc2   :  { %1889 = vmatprep.subr.bf16.mxu1 %v3101_v13  ;;  %v3189_v13 = vld [vmem:[#allocation2 + $0x768] ss:$16 sps:$4 sm:$0xff]  }
  0xc4   :  { %1847 = vmatpush2.bf16.msra.mxu0 %v3096_v14  ;;  %v3194_v14 = vld [vmem:[#allocation2 + $0x54c] ss:$16 sps:$4 sm:$0xff]  }
  0xc5   :  { %1890 = vmatpush2.bf16.msra.mxu1 %v3099_v15  ;;  %1848 = vmatprep.subr.bf16.mxu0 %v3104_v16  ;;  %v3197_v15 = vld [vmem:[#allocation2 + $0x74c] ss:$16 sps:$4 sm:$0xff]   ;;  %v3192_v16 = vld [vmem:[#allocation2 + $0x548] ss:$16 sps:$4 sm:$0xff]  }
  0xc6   :  { %1891 = vmatprep.subr.bf16.mxu1 %v3107_v17  ;;  %v3195_v17 = vld [vmem:[#allocation2 + $0x748] ss:$16 sps:$4 sm:$0xff]  }
  0xc8   :  { %1849 = vmatpush2.bf16.msra.mxu0 %v3102_v18  ;;  %v3200_v18 = vld [vmem:[#allocation2 + $0x52c] ss:$16 sps:$4 sm:$0xff]  }
  0xc9   :  { %1892 = vmatpush2.bf16.msra.mxu1 %v3105_v19  ;;  %1850 = vmatprep.subr.bf16.mxu0 %v3110_v22  ;;  %v3203_v19 = vld [vmem:[#allocation2 + $0x72c] ss:$16 sps:$4 sm:$0xff]   ;;  %v3198_v22 = vld [vmem:[#allocation2 + $0x528] ss:$16 sps:$4 sm:$0xff]  }
  0xca   :  { %1893 = vmatprep.subr.bf16.mxu1 %v3113_v23  ;;  %v3201_v23 = vld [vmem:[#allocation2 + $0x728] ss:$16 sps:$4 sm:$0xff]  }
  0xcc   :  { %1851 = vmatpush2.bf16.msra.mxu0 %v3108_v24  ;;  %v3206_v24 = vld [vmem:[#allocation2 + $0x50c] ss:$16 sps:$4 sm:$0xff]  }
  0xcd   :  { %1894 = vmatpush2.bf16.msra.mxu1 %v3111_v25  ;;  %1906 = vmatprep.subr.bf16.mxu0 %v3116_v26  ;;  %v3209_v25 = vld [vmem:[#allocation2 + $0x70c] ss:$16 sps:$4 sm:$0xff]   ;;  %v3204_v26 = vld [vmem:[#allocation2 + $0x508] ss:$16 sps:$4 sm:$0xff]  }
  0xce   :  { %1949 = vmatprep.subr.bf16.mxu1 %v3119_v27  ;;  %v3207_v27 = vld [vmem:[#allocation2 + $0x708] ss:$16 sps:$4 sm:$0xff]  }
  0xcf   :  { %1853 = vmatmul.mubr.bf16.vlgmr.msra.gmra.mxu0 %v3365_v8  ;;  %v3137_v8 = vld [vmem:[#allocation2 + $0x68c] ss:$16 sps:$4 sm:$0xff]  }
  0xd0   :  { %1896 = vmatmul.mubr.bf16.vlgmr.msra.gmra.mxu1 %v3367_v9  ;;  %1907 = vmatpush1.bf16.msra.mxu0 %v3114_v28  ;;  %v3132_v9 = vld [vmem:[#allocation2 + $0x488] ss:$16 sps:$4 sm:$0xff]  }
  0xd1   :  { %1950 = vmatpush1.bf16.msra.mxu1 %v3117_v29  ;;  %1908 = vmatprep.subr.bf16.mxu0 %v3122_v30  ;;  %v3210_v28 = vld [vmem:[%s3554_s3 + $0x78] sm:$0xff]   ;;  %v3212_v30 = vld [vmem:[%s3554_s3 + $0x70] sm:$0xff]  }
  0xd2   :  { %1951 = vmatprep.subr.bf16.mxu1 %v3125_v31  ;;  %1938 = vmatprep.mubr.bf16.mxu0 %v3393_v41  ;;  %v3138_v41 = vld [vmem:[#allocation2 + $0x468] ss:$16 sps:$4 sm:$0xff]   ;;  %v3213_v31 = vld [vmem:[%s3554_s3 + $0x30] sm:$0xff]  }
  0xd3   :  { %1981 = vmatprep.mubr.bf16.mxu1 %v3397_v43  ;;  %v3141_v43 = vld [vmem:[#allocation2 + $0x668] ss:$16 sps:$4 sm:$0xff]  }
  0xd4   :  { %1909 = vmatpush1.bf16.msra.mxu0 %v3120_v32  ;;  %v3211_v29 = vld [vmem:[%s3554_s3 + $0x38] sm:$0xff]   ;;  %v3214_v32 = vld [vmem:[%s3554_s3 + $0x68] sm:$0xff]  }
  0xd5   :  { %1952 = vmatpush1.bf16.msra.mxu1 %v3123_v33  ;;  %1910 = vmatprep.subr.bf16.mxu0 %v3128_v34  ;;  %v3215_v33 = vld [vmem:[%s3554_s3 + $0x28] sm:$0xff]   ;;  %v3226_v34 = vld [vmem:[%s3554_s3 + $0xf8] sm:$0xff]  }
  0xd6   :  { %1953 = vmatprep.subr.bf16.mxu1 %v3131_v35  ;;  %v3227_v35 = vld [vmem:[%s3554_s3 + $0xb8] sm:$0xff]  }
  0xd8   :  { %1911 = vmatpush1.bf16.msra.mxu0 %v3126_v36  ;;  %v3228_v36 = vld [vmem:[%s3554_s3 + $0xf0] sm:$0xff]  }
  0xd9   :  { %1954 = vmatpush1.bf16.msra.mxu1 %v3129_v37  ;;  %1912 = vmatprep.subr.bf16.mxu0 %v3134_v38  ;;  %v3218_v37 = vld [vmem:[%s3554_s3 + $0x58] sm:$0xff]   ;;  %v3229_v38 = vld [vmem:[%s3554_s3 + $0xb0] sm:$0xff]  }
  0xda   :  { %1955 = vmatprep.subr.bf16.mxu1 %v3137_v8  ;;  %v3219_v8 = vld [vmem:[%s3554_s3 + $0x18] sm:$0xff]  }
  0xdc   :  { %1913 = vmatpush1.bf16.msra.mxu0 %v3132_v9  ;;  %v3230_v9 = vld [vmem:[%s3554_s3 + $0xe8] sm:$0xff]  }
  0xdd   :  { %1956 = vmatpush1.bf16.msra.mxu1 %v3135_v53  ;;  %1914 = vmatprep.subr.bf16.mxu0 %v3140_v55  ;;  %v3220_v53 = vld [vmem:[%s3554_s3 + $0x50] sm:$0xff]   ;;  %v3231_v55 = vld [vmem:[%s3554_s3 + $0xa8] sm:$0xff]  }
  0xde   :  { %1957 = vmatprep.subr.bf16.mxu1 %v3143_v39  ;;  %v3221_v39 = vld [vmem:[%s3554_s3 + $0x10] sm:$0xff]  }
  0xe0   :  { %1915 = vmatpush1.bf16.msra.mxu0 %v3138_v41  ;;  %v3232_v41 = vld [vmem:[%s3554_s3 + $0xe0] sm:$0xff]  }
  0xe1   :  { %1958 = vmatpush1.bf16.msra.mxu1 %v3141_v43  ;;  %1916 = vmatprep.subr.bf16.mxu0 %v3146_v40  ;;  %v3222_v43 = vld [vmem:[%s3554_s3 + $0x48] sm:$0xff]   ;;  %v3233_v40 = vld [vmem:[%s3554_s3 + $0xa0] sm:$0xff]  }
  0xe2   :  { %1959 = vmatprep.subr.bf16.mxu1 %v3149_v42  ;;  %v3223_v42 = vld [vmem:[%s3554_s3 + $0x8] sm:$0xff]  }
  0xe4   :  { %1917 = vmatpush1.bf16.msra.mxu0 %v3144_v44  ;;  %v3224_v44 = vld [vmem:[%s3554_s3 + $0x40] sm:$0xff]  }
  0xe5   :  { %1960 = vmatpush1.bf16.msra.mxu1 %v3147_v45  ;;  %1918 = vmatprep.subr.bf16.mxu0 %v3152_v46  ;;  %v3225_v45 = vld [vmem:[%s3554_s3] sm:$0xff]   ;;  %v308_v46 = vlaneseq }
  0xe6   :  { %1961 = vmatprep.subr.bf16.mxu1 %v3155_v47 }
  0xe7   :  { %v3491_v47 = vshrl.u32 %v308_v46, 7 }
  0xe8   :  { %1919 = vmatpush1.bf16.msra.mxu0 %v3150_v48 }
  0xe9   :  { %1962 = vmatpush1.bf16.msra.mxu1 %v3153_v49  ;;  %1920 = vmatprep.subr.bf16.mxu0 %v3158_v50  ;;  %v314_v50 = vsub.s32 1, %v3491_v47 }
  0xea   :  { %1963 = vmatprep.subr.bf16.mxu1 %v3161_v51  ;;  %v3497_v51 = vld [vmem:[%s3553_s2] sm:$0xf] }
  0xec   :  { %1921 = vmatpush1.bf16.msra.mxu0 %v3156_v52  ;;  %v310_v52 = vsub.s32 0, %v3491_v47 }
  0xed   :  { %1964 = vmatpush1.bf16.msra.mxu1 %v3159_v54  ;;  %1922 = vmatprep.subr.bf16.mxu0 %v3164_v56 }
  0xee   :  { %1965 = vmatprep.subr.bf16.mxu1 %v3167_v57  ;;  %v315_v57 = vrot.slane %v3497_v51, %v314_v50 }
  0xf0   :  { %1923 = vmatpush2.bf16.msra.mxu0 %v3162_v58  ;;  %v311_v58 = vrot.slane %v3497_v51, %v310_v52 }
  0xf1   :  { %1966 = vmatpush2.bf16.msra.mxu1 %v3165_v59  ;;  %1924 = vmatprep.subr.bf16.mxu0 %v3170_v60 }
  0xf2   :  { %1967 = vmatprep.subr.bf16.mxu1 %v3173_v61 }
  0xf4   :  { %1925 = vmatpush2.bf16.msra.mxu0 %v3168_v62 }
  0xf5   :  { %1968 = vmatpush2.bf16.msra.mxu1 %v3171_v63  ;;  %1926 = vmatprep.subr.bf16.mxu0 %v3176_v0 }
  0xf6   :  { %1969 = vmatprep.subr.bf16.mxu1 %v3179_v1  ;;  %v3234_v1 = vld [vmem:[%s3554_s3 + $0xd8] sm:$0xff]  }
  0xf8   :  { %1927 = vmatpush2.bf16.msra.mxu0 %v3174_v2 }
  0xf9   :  { %1970 = vmatpush2.bf16.msra.mxu1 %v3177_v3  ;;  %1928 = vmatprep.subr.bf16.mxu0 %v3182_v4  ;;  %v3235_v3 = vld [vmem:[%s3554_s3 + $0x98] sm:$0xff]  }
  0xfa   :  { %1971 = vmatprep.subr.bf16.mxu1 %v3185_v5 }
  0xfc   :  { %1929 = vmatpush2.bf16.msra.mxu0 %v3180_v6 }
  0xfd   :  { %1972 = vmatpush2.bf16.msra.mxu1 %v3183_v7  ;;  %1930 = vmatprep.subr.bf16.mxu0 %v3188_v10 }
  0xfe   :  { %1973 = vmatprep.subr.bf16.mxu1 %v3191_v11 }
 0x100   :  { %1931 = vmatpush2.bf16.msra.mxu0 %v3186_v12 }
 0x101   :  { %1974 = vmatpush2.bf16.msra.mxu1 %v3189_v13  ;;  %1932 = vmatprep.subr.bf16.mxu0 %v3194_v14  ;;  %v3236_v13 = vld [vmem:[%s3554_s3 + $0xd0] sm:$0xff]  }
 0x102   :  { %1975 = vmatprep.subr.bf16.mxu1 %v3197_v15 }
 0x104   :  { %1933 = vmatpush2.bf16.msra.mxu0 %v3192_v16  ;;  %v3237_v16 = vld [vmem:[%s3554_s3 + $0x90] sm:$0xff]  }
 0x105   :  { %1976 = vmatpush2.bf16.msra.mxu1 %v3195_v17  ;;  %1934 = vmatprep.subr.bf16.mxu0 %v3200_v18 }
 0x106   :  { %1977 = vmatprep.subr.bf16.mxu1 %v3203_v19 }
 0x108   :  { %1935 = vmatpush2.bf16.msra.mxu0 %v3198_v22 }
 0x109   :  { %1978 = vmatpush2.bf16.msra.mxu1 %v3201_v23  ;;  %1936 = vmatprep.subr.bf16.mxu0 %v3206_v24 }
 0x10a   :  { %1979 = vmatprep.subr.bf16.mxu1 %v3209_v25  ;;  %v3238_v25 = vld [vmem:[%s3554_s3 + $0xc8] sm:$0xff]  }
 0x10c   :  { %1937 = vmatpush2.bf16.msra.mxu0 %v3204_v26 }
 0x10d   :  { %1980 = vmatpush2.bf16.msra.mxu1 %v3207_v27  ;;  %2763 = vmatprep.subr.bf16.mxu0 %v3210_v28 }
 0x10e   :  { %2785 = vmatprep.subr.bf16.mxu1 %v3226_v34 }
 0x10f   :  { %1939 = vmatmul.mubr.bf16.vlgmr.msra.gmra.mxu0 %v3403_v20  ;;  %v3216_v20 = vld [vmem:[%s3554_s3 + $0x60] sm:$0xff]   ;;  %v1682_v48 = vpop.f32.mrf.mxu0 }
 0x110   :  { %1982 = vmatmul.mubr.bf16.vlgmr.msra.gmra.mxu1 %v3407_v21  ;;  %2764 = vmatpush3.bf16.msra.mxu0 %v3211_v29  ;;  %v3217_v21 = vld [vmem:[%s3554_s3 + $0x20] sm:$0xff]   ;;  %v1725_v49 = vpop.f32.mrf.mxu1  ;;  %v1683_v62 = vadd.f32 %v1682_v48, %v311_v58  ;;  %v3239_v29 = vld [vmem:[%s3554_s3 + $0x88] sm:$0xff]  }
 0x111   :  { %2765 = vmatprep.subr.bf16.mxu0 %v3212_v30  ;;  %2786 = vmatpush3.bf16.msra.mxu1 %v3227_v35  ;;  %v1684_v54 = vpop.f32.mrf.mxu0  ;;  %v3241_v35 = vld [vmem:[%s3554_s3 + $0x80] sm:$0xff]  }
 0x112   :  { %2787 = vmatprep.subr.bf16.mxu1 %v3228_v36  ;;  %v1727_v56 = vpop.f32.mrf.mxu1  ;;  %v1685_v61 = vadd.f32 %v1684_v54, %v315_v57  ;;  %v1726_v10 = vadd.f32 %v1725_v49, %v1683_v62 }
 0x113   :  { %v1686_v59 = vpop.f32.mrf.mxu0 }
 0x114   :  { %2766 = vmatpush3.bf16.msra.mxu0 %v3213_v31  ;;  %v1729_v60 = vpop.f32.mrf.mxu1  ;;  %v1687_v2 = vadd.f32 %v1686_v59, %v311_v58  ;;  %v1728_v6 = vadd.f32 %v1727_v56, %v1685_v61 }
 0x115   :  { %2767 = vmatprep.subr.bf16.mxu0 %v3214_v32  ;;  %2788 = vmatpush3.bf16.msra.mxu1 %v3229_v38  ;;  %v1688_v63 = vpop.f32.mrf.mxu0 }
 0x116   :  { %2789 = vmatprep.subr.bf16.mxu1 %v3230_v9  ;;  %v1731_v0 = vpop.f32.mrf.mxu1  ;;  %v1689_v7 = vadd.f32 %v1688_v63, %v315_v57  ;;  %v1730_v14 = vadd.f32 %v1729_v60, %v1687_v2 }
 0x118   :  { %2768 = vmatpush3.bf16.msra.mxu0 %v3215_v33  ;;  %v1732_v22 = vadd.f32 %v1731_v0, %v1689_v7 }
 0x119   :  { %2769 = vmatprep.subr.bf16.mxu0 %v3216_v20  ;;  %2790 = vmatpush3.bf16.msra.mxu1 %v3231_v55  ;;  %v3240_v20 = vld [vmem:[%s3554_s3 + $0xc0] sm:$0xff]   ;;  %v318_v55 = vsub.s32 2, %v3491_v47 }
 0x11a   :  { %2791 = vmatprep.subr.bf16.mxu1 %v3232_v41 }
 0x11c   :  { %2770 = vmatpush3.bf16.msra.mxu0 %v3217_v21 }
 0x11d   :  { %2771 = vmatprep.subr.bf16.mxu0 %v3218_v37  ;;  %2792 = vmatpush3.bf16.msra.mxu1 %v3233_v40  ;;  %v319_v40 = vrot.slane %v3497_v51, %v318_v55 }
 0x11e   :  { %2793 = vmatprep.subr.bf16.mxu1 %v3234_v1 }
 0x120   :  { %2772 = vmatpush3.bf16.msra.mxu0 %v3219_v8 }
 0x121   :  { %2773 = vmatprep.subr.bf16.mxu0 %v3220_v53  ;;  %2794 = vmatpush3.bf16.msra.mxu1 %v3235_v3  ;;  %v322_v53 = vsub.s32 3, %v3491_v47 }
 0x122   :  { %2795 = vmatprep.subr.bf16.mxu1 %v3236_v13 }
 0x124   :  { %2774 = vmatpush3.bf16.msra.mxu0 %v3221_v39 }
 0x125   :  { %2775 = vmatprep.subr.bf16.mxu0 %v3222_v43  ;;  %2796 = vmatpush3.bf16.msra.mxu1 %v3237_v16  ;;  %v323_v43 = vrot.slane %v3497_v51, %v322_v53 }
 0x126   :  { %2797 = vmatprep.subr.bf16.mxu1 %v3238_v25 }
 0x128   :  { %2776 = vmatpush3.bf16.msra.mxu0 %v3223_v42 }
 0x129   :  { %2777 = vmatprep.subr.bf16.mxu0 %v3224_v44  ;;  %2798 = vmatpush3.bf16.msra.mxu1 %v3239_v29 }
 0x12a   :  { %2799 = vmatprep.subr.bf16.mxu1 %v3240_v20 }
 0x12c   :  { %2778 = vmatpush3.bf16.msra.mxu0 %v3225_v45 }
 0x12d   :  { %2800 = vmatpush3.bf16.msra.mxu1 %v3241_v35 }
 0x14f   :  { %v1768_v4 = vpop.f32.mrf.mxu0 }
 0x150   :  { %v1811_v5 = vpop.f32.mrf.mxu1  ;;  %v1769_v17 = vadd.f32 %v1768_v4, %v1726_v10 }
 0x151   :  { %v1770_v11 = vpop.f32.mrf.mxu0 }
 0x152   :  { %v1813_v12 = vpop.f32.mrf.mxu1  ;;  %v1771_v15 = vadd.f32 %v1770_v11, %v1728_v6  ;;  %v1812_v30 = vadd.f32 %v1811_v5, %v1769_v17  ;;  %v3242_v17 = vld [vmem:[%s3556_s5 + $0x8] sm:$0xff]  }
 0x153   :  { %v1772_v18 = vpop.f32.mrf.mxu0 }
 0x154   :  { %v1815_v19 = vpop.f32.mrf.mxu1  ;;  %v1773_v23 = vadd.f32 %v1772_v18, %v1730_v14  ;;  %v1814_v26 = vadd.f32 %v1813_v12, %v1771_v15  ;;  %v1992_v36 = vmax.f32 %v1812_v30, 0.0  ;;  %v3299_v18 = vmov 0.0  }
 0x155   :  { %v1774_v24 = vpop.f32.mrf.mxu0  ;;  %2810 = vmatprep.subr.bf16.mxu0 %v3299_v18 }
 0x156   :  { %v1816_v27 = vadd.f32 %v1815_v19, %v1773_v23  ;;  %v1775_v28 = vadd.f32 %v1774_v24, %v1732_v22  ;;  %v1817_v31 = vpop.f32.mrf.mxu1  ;;  %v1993_v21 = vmax.f32 %v1814_v26, 0.0  ;;  %v3243_v19 = vld [vmem:[%s3556_s5] sm:$0xff]  }
 0x158   :  { %v1818_v32 = vadd.f32 %v1817_v31, %v1775_v28  ;;  %v1996_v33 = vmax.f32 %v1816_v27, 0.0  ;;  %v2726_v28 = vld [vmem:[%s3555_s4] ss:$0 sm:$0xff]  ;;  %s3301_s4 = smov [#allocation5]  }
 0x15a   :  { %v1997_v34 = vmax.f32 %v1818_v32, 0.0  ;;  %v2000_v38 = vpack.c.bf16 %v1996_v33, %v1992_v36 }
 0x15c   :  { %v2001_v37 = vpack.c.bf16 %v1997_v34, %v1993_v21 }
 0x15e   :  { %2299 = vmatprep.mubr.bf16.mxu0 %v2001_v37 }
 0x15f   :  { %2300 = vmatmul.mubr.bf16.vlgmr.msra.gmra.mxu0 %v2000_v38 }
 0x160   :  { %2811 = vmatpush3.bf16.msra.mxu0 %v3242_v17  ;;  %2814 = vmatprep.mubr.msk.bf16.mxu0 %vm3300_vm0, %v3299_v18 }
 0x161   :  { %2812 = vmatprep.subr.bf16.mxu0 %v3299_v18 }
 0x164   :  { %2813 = vmatpush3.bf16.msra.mxu0 %v3243_v19 }
 0x18f   :  { %v1854_v8 = vpop.f32.mrf.mxu0 }
 0x190   :  { %v1897_v9 = vpop.f32.mrf.mxu1  ;;  %v1855_v46 = vadd.f32 %v1854_v8, %v319_v40 }
 0x191   :  { %v1856_v39 = vpop.f32.mrf.mxu0 }
 0x192   :  { %v1899_v41 = vpop.f32.mrf.mxu1  ;;  %v1857_v45 = vadd.f32 %v1856_v39, %v323_v43  ;;  %v1898_v58 = vadd.f32 %v1897_v9, %v1855_v46  ;;  %v2759_v9 = vld [vmem:[%s3557_s6] ss:$0 sm:$0xff]  ;;  %s2450_s6 = sshll.u32 %s3301_s4, 4  ;;  %s2451_s6 = int_to_ptr.vmem [resolvable:$true] %s2450_s6 }
 0x193   :  { %v1858_v42 = vpop.f32.mrf.mxu0  ;;  %s3272_s19 = scalar_lea.vmem %s2451_s6, 256  ;;  %p3277_p6 = scmp.lt.s32.totalorder %s2451_s6, %s2451_s6 }
 0x194   :  { %v1901_v44 = vpop.f32.mrf.mxu1  ;;  %v1859_v50 = vadd.f32 %v1858_v42, %v319_v40  ;;  %v1900_v56 = vadd.f32 %v1899_v41, %v1857_v45  ;;  %p3273_p5 = scmp.ne.s32.totalorder %s2451_s6, %s3272_s19  ;;  %p3278_p7 = scmp.lt.s32.totalorder %s3272_s19, %s3272_s19 }
 0x195   :  { %v1860_v48 = vpop.f32.mrf.mxu0 }
 0x196   :  { %v1903_v49 = vpop.f32.mrf.mxu1  ;;  %v1861_v57 = vadd.f32 %v1860_v48, %v323_v43  ;;  %v1902_v60 = vadd.f32 %v1901_v44, %v1859_v50  ;;  %p3279_p8 = por %p3278_p7, %p3277_p6 }
 0x198   :  { %v1904_v51 = vadd.f32 %v1903_v49, %v1861_v57  ;;  %p3280_p9 = pnand %p3279_p8, %p3273_p5 }
 0x1cf   :  { %v1940_v52 = vpop.f32.mrf.mxu0 }
 0x1d0   :  { %v1983_v54 = vpop.f32.mrf.mxu1  ;;  %v1941_v62 = vadd.f32 %v1940_v52, %v1898_v58 }
 0x1d1   :  { %v1942_v59 = vpop.f32.mrf.mxu0 }
 0x1d2   :  { %v1985_v47 = vpop.f32.mrf.mxu1  ;;  %v1943_v61 = vadd.f32 %v1942_v59, %v1900_v56  ;;  %v1984_v6 = vadd.f32 %v1983_v54, %v1941_v62 }
 0x1d3   :  { %v1944_v63 = vpop.f32.mrf.mxu0 }
 0x1d4   :  { %v1987_v0 = vpop.f32.mrf.mxu1  ;;  %v1945_v1 = vadd.f32 %v1944_v63, %v1902_v60  ;;  %v1986_v3 = vadd.f32 %v1985_v47, %v1943_v61  ;;  %v1994_v14 = vmax.f32 %v1984_v6, 0.0 }
 0x1d5   :  { %v1946_v2 = vpop.f32.mrf.mxu0 }
 0x1d6   :  { %v1988_v4 = vadd.f32 %v1987_v0, %v1945_v1  ;;  %v1947_v5 = vadd.f32 %v1946_v2, %v1904_v51  ;;  %v1989_v7 = vpop.f32.mrf.mxu1  ;;  %v1995_v12 = vmax.f32 %v1986_v3, 0.0 }
 0x1d8   :  { %v1990_v10 = vadd.f32 %v1989_v7, %v1947_v5  ;;  %v1998_v11 = vmax.f32 %v1988_v4, 0.0 }
 0x1da   :  { %v1999_v13 = vmax.f32 %v1990_v10, 0.0  ;;  %v2002_v16 = vpack.c.bf16 %v1998_v11, %v1994_v14 }
 0x1dc   :  { %v2003_v15 = vpack.c.bf16 %v1999_v13, %v1995_v12 }
 0x1de   :  { %2340 = vmatprep.mubr.bf16.mxu1 %v2003_v15 }
 0x1df   :  { %2341 = vmatmul.mubr.bf16.vlgmr.msra.gmra.mxu1 %v2002_v16 }
 0x21f   :  { %v2779_v22 = vpop.f32.mrf.mxu0 }
 0x221   :  { %v2780_v23 = vpop.f32.mrf.mxu0 }
 0x222   :  { %v2781_v27 = vadd.f32 %v2780_v23, %v2779_v22 }
 0x223   :  { %v2782_v24 = vpop.f32.mrf.mxu0 }
 0x224   :  { %v2302_v33 = vadd.f32 %v2781_v27, %v2726_v28 }
 0x225   :  { %v2783_v25 = vpop.f32.mrf.mxu0 }
 0x226   :  { %v2784_v30 = vadd.f32 %v2783_v25, %v2782_v24 }
 0x228   :  { %v2305_v21 = vadd.f32 %v2784_v30, %v2726_v28 }
 0x29f   :  { %v2801_v26 = vpop.f32.mrf.mxu1 }
 0x2a1   :  { %v2802_v29 = vpop.f32.mrf.mxu1 }
 0x2a2   :  { %v2803_v31 = vadd.f32 %v2802_v29, %v2801_v26 }
 0x2a3   :  { %v2804_v32 = vpop.f32.mrf.mxu1 }
 0x2a4   :  { %v2343_v34 = vadd.f32 %v2803_v31, %v2302_v33 }
 0x2a5   :  { %v2805_v20 = vpop.f32.mrf.mxu1 }
 0x2a6   :  { %v2806_v35 = vadd.f32 %v2805_v20, %v2804_v32  ;;  %v2349_v37 = vmax.f32 %v2343_v34, 0.0 }
 0x2a8   :  { %v2346_v36 = vadd.f32 %v2806_v35, %v2305_v21 }
 0x2aa   :  { %v2350_v38 = vmax.f32 %v2346_v36, 0.0 }
 0x2ac   :  { %v2351_v8 = vpack.c.bf16 %v2350_v38, %v2349_v37 }
 0x2ae   :  { %2815 = vmatmul.mubr.msk.bf16.vlgmr.msra.gmra.mxu0 %vm2375_vm1, %v2351_v8 }
 0x36e   :  { %v2413_v53 = vpop.f32.mrf.mxu0 }
 0x36f   :  { %v2414_v55 = vadd.f32 %v2759_v9, %v2413_v53 }
 0x370   :  { %v2816_v39 = vpop.f32.mrf.mxu0 }
 0x371   :  { %v2421_v41 = vsel %vm2420_vm2, %v2414_v55, -inf }
 0x372   :  { %2422 = vmax.xlane.f32.xlu0 %v2421_v41  ;;  %v2416_v43 = vpop.f32.mrf.mxu0 }
 0x373   :  { %v2417_v40 = vadd.f32 %v2759_v9, %v2416_v43 }
 0x374   :  { %v2817_v42 = vpop.f32.mrf.mxu0 }
 0x375   :  { %v2424_v44 = vsel %vm2420_vm2, %v2417_v40, -inf }
 0x376   :  { %2425 = vmax.xlane.f32.xlu0 %v2424_v44 }
 0x3fb   :  { %v2423_v45 = vpop.xlane.xlu0 %2422 }
 0x3fc   :  { %v2427_v46 = vsub.f32 %v2414_v55, %v2423_v45 }
 0x3fe   :  { %v2429_v48 = vmul.f32 1.442695, %v2427_v46 }
 0x3ff   :  { %v2426_v49 = vpop.xlane.xlu0 %2425 }
 0x400   :  { %3244 = vpow2.f32 %v2429_v48  ;;  %v2428_v50 = vsub.f32 %v2417_v40, %v2426_v49 }
 0x402   :  { %v2431_v52 = vmul.f32 1.442695, %v2428_v50 }
 0x404   :  { %3246 = vpow2.f32 %v2431_v52 }
 0x40d   :  { %v3245_v54 = vpop.eup %3244 }
 0x40e   :  { %v2433_v56 = vsel %vm2420_vm2, %v3245_v54, 0.0 }
 0x40f   :  { %2434 = vadd.xlane.f32.xlu1 %v2433_v56 }
 0x411   :  { %v3247_v57 = vpop.eup %3246 }
 0x412   :  { %v2436_v58 = vsel %vm2420_vm2, %v3247_v57, 0.0 }
 0x413   :  { %2437 = vadd.xlane.f32.xlu1 %v2436_v58 }
 0x498   :  { %v2435_v59 = vpop.xlane.xlu1 %2434 }
 0x499   :  { %3248 = vrcp.f32 %v2435_v59 }
 0x49c   :  { %v2438_v47 = vpop.xlane.xlu1 %2437 }
 0x49d   :  { %3250 = vrcp.f32 %v2438_v47 }
 0x4a6   :  { %v3249_v60 = vpop.eup %3248 }
 0x4a7   :  { %v2441_v61 = vmul.f32 %v3249_v60, %v3245_v54 }
 0x4a9   :  { %2443 = vst.msk [vmem:[#allocation5] sm:$0xff] %vm2420_vm2, %v2441_v61 }
 0x4aa   :  { %v3251_v62 = vpop.eup %3250 }
 0x4ab   :  { %v2442_v63 = vmul.f32 %v3251_v62, %v3247_v57 }
 0x4ad   :  { %2444 = vst.msk [vmem:[#allocation5 + $0x8] sm:$0xff] %vm2420_vm2, %v2442_v63 }
 0x4ae   :  { %3283 = shalt.err (!%p3280_p9)
}
 0x4af   :  { %s3302_s20 = smov 128   ;;  %s3303_s21 = smov 8  }
 0x4b0   :  { %2456 = dma.vmem_to_hbm [thread:$0]  %s2451_s6, 256, %s3558_s7, [#allocation4], %s3302_s20, %s3302_s20, %s3303_s21  }
 0x4b1   :  { %3294 = dma.done.wait [#allocation4], 256  }
 0x4b2   :  { %3295 = vsyncadd [#allocation4], 4294967040 }
 0x4b3   :  { %2460 = vsyncpa [#allocation3], 1 }
 0x4b4   :  { %2461 = vsyncpa [#allocation4], 1 }

</bundles_post_ra>
